<compile_context>
chip_gen: v5e
topology: v5e:2x2
jax: 0.10.0
libtpu: 0.0.40
codegen_flags: <defaults>
</compile_context>

<pallas_src>
import jax
import jax.numpy as jnp
from jax import lax
from jax.experimental import pallas as pl
from jax.experimental.pallas import tpu as pltpu


_MAX_ROW_TILE = 1024  # per-step VMEM use is tiny; overhead amortization only.


# ----------------------------- Pallas kernel ------------------------------- #

def _fused_encoder_kernel(idx_ref, tbl_ref, w1_ref, b1_ref, w2_ref, b2_ref, o_ref):
    """One row-tile of:  gather(table, idx) -> Linear -> ReLU -> Linear.

    The gather is an exact one-hot @ table MXU matmul (table is VMEM-resident,
    one-hot rows contain a single 1.0, f32 accumulation copies the bf16 value
    exactly).  Weights/activations feeding the MXU are bf16, biases f32,
    accumulation f32; the final store is bf16 and lane-dense (128 wide).
    """
    rows = idx_ref.shape[0]
    vocab = tbl_ref.shape[0]

    row_ids = idx_ref[...]                                        # (rows, 1) i32
    col_ids = lax.broadcasted_iota(jnp.int32, (rows, vocab), 1)   # (rows, vocab)
    onehot = jnp.where(row_ids == col_ids, 1.0, 0.0).astype(tbl_ref.dtype)

    x = jnp.dot(onehot, tbl_ref[...],
                preferred_element_type=jnp.float32)               # exact gather
    x = x.astype(w1_ref.dtype)                                    # bf16 for MXU

    h = jnp.dot(x, w1_ref[...],
                preferred_element_type=jnp.float32) + b1_ref[...]
    # TODO(synk): nn.Dropout(p=0.1) omitted (eval-mode identity); training-mode
    # dropout would need pltpu.prng_seed / pltpu.prng_random_bits masking here.
    h = jnp.maximum(h, 0.0).astype(w2_ref.dtype)                  # bf16 for MXU

    o = jnp.dot(h, w2_ref[...],
                preferred_element_type=jnp.float32) + b2_ref[...]
    o_ref[...] = o.astype(o_ref.dtype)                            # bf16, 128-lane vst


# ----------------------------- tiling & wrapper ----------------------------- #

def _choose_tiling(n_rows):
    """Pick (row_tile, grid, padded_rows).

    Prefer an even number of grid steps with row_tile a multiple of 16 (bf16
    sublane packing) that divides n_rows exactly -> balanced across v7x's two
    TensorCores and zero padding.  Fall back to a single padded step.
    """
    for g in (2, 4, 6, 8, 12, 16):
        if n_rows % g == 0:
            rt = n_rows // g
            if rt % 16 == 0 and rt <= _MAX_ROW_TILE:
                return rt, g, n_rows
    rt = min(_MAX_ROW_TILE, 16 * pl.cdiv(n_rows, 16))
    n_pad = rt * pl.cdiv(n_rows, rt)
    return rt, n_pad // rt, n_pad


def fused_bottom_mlp(idx, table, w1, b1, w2, b2):
    """idx: (N,) int32 rows of `table` -> (N, d_o_pad) bf16 through the MLP."""
    n = idx.shape[0]
    vocab, dim = table.shape
    d_h = w1.shape[1]     # padded hidden width (multiple of 128)
    d_o = w2.shape[1]     # padded output width (multiple of 128)

    row_tile, grid_n, n_pad = _choose_tiling(n)
    idx2 = idx.reshape(n, 1).astype(jnp.int32)
    if n_pad != n:
        # Padded rows gather row 0 and are sliced off below (finite garbage).
        idx2 = jnp.pad(idx2, ((0, n_pad - n), (0, 0)))

    out = pl.pallas_call(
        _fused_encoder_kernel,
        out_shape=jax.ShapeDtypeStruct((n_pad, d_o), jnp.bfloat16),
        grid_spec=pl.GridSpec(
            grid=(grid_n,),
            in_specs=[
                pl.BlockSpec((row_tile, 1), lambda i: (i, 0)),   # row indices
                pl.BlockSpec((vocab, dim), lambda i: (0, 0)),    # emb table (resident)
                pl.BlockSpec((dim, d_h), lambda i: (0, 0)),      # W1 (resident)
                pl.BlockSpec((1, d_h), lambda i: (0, 0)),        # b1
                pl.BlockSpec((d_h, d_o), lambda i: (0, 0)),      # W2 (resident)
                pl.BlockSpec((1, d_o), lambda i: (0, 0)),        # b2
            ],
            out_specs=pl.BlockSpec((row_tile, d_o), lambda i: (i, 0)),
        ),
        compiler_params=pltpu.CompilerParams(
            dimension_semantics=("parallel",)),
    )(idx2, table, w1, b1, w2, b2)
    return out[:n]


# --------------------------- parameter creation ----------------------------- #

def init_single_cf_params(key, user_count, item_count, dim):
    """Synthetic parameters matching SingleCF.__init__ shapes.

    * user/item embeddings are concatenated into one bf16 table (item rows are
      offset by user_count) so the kernel needs a single VMEM-resident gather.
    * Linear weights are stored (in, out), bf16, and zero-padded ONCE to
      lane-dense widths (hidden -> mult of 128, out -> mult of 128); biases f32.
    """
    k_ue, k_ie, k_w1, k_b1, k_w2, k_b2 = jax.random.split(key, 6)
    d_h, d_o = dim // 2, dim // 4
    d_h_pad = 128 * pl.cdiv(d_h, 128)
    d_o_pad = 128 * pl.cdiv(d_o, 128)

    # nn.init.normal_(std=0.01) for embeddings.
    user_emb = (0.01 * jax.random.normal(k_ue, (user_count, dim), jnp.float32)
                ).astype(jnp.bfloat16)
    item_emb = (0.01 * jax.random.normal(k_ie, (item_count, dim), jnp.float32)
                ).astype(jnp.bfloat16)
    emb_table = jnp.concatenate([user_emb, item_emb], axis=0)   # (U+I, dim) bf16

    # PyTorch Linear default init range 1/sqrt(fan_in); stored (in, out).
    lim1 = 1.0 / float(dim) ** 0.5
    lim2 = 1.0 / float(d_h) ** 0.5
    w1 = jax.random.uniform(k_w1, (dim, d_h), jnp.float32, -lim1, lim1)
    b1 = jax.random.uniform(k_b1, (1, d_h), jnp.float32, -lim1, lim1)
    w2 = jax.random.uniform(k_w2, (d_h, d_o), jnp.float32, -lim2, lim2)
    b2 = jax.random.uniform(k_b2, (1, d_o), jnp.float32, -lim2, lim2)

    # One-time zero-padding to lane-dense shapes (padding contributes exactly 0).
    w1p = jnp.pad(w1, ((0, 0), (0, d_h_pad - d_h))).astype(jnp.bfloat16)
    b1p = jnp.pad(b1, ((0, 0), (0, d_h_pad - d_h)))
    w2p = jnp.pad(w2, ((0, d_h_pad - d_h), (0, d_o_pad - d_o))).astype(jnp.bfloat16)
    b2p = jnp.pad(b2, ((0, 0), (0, d_o_pad - d_o)))

    return dict(emb_table=emb_table, w1=w1p, b1=b1p, w2=w2p, b2=b2p)


# ------------------------------ forward pass -------------------------------- #

def make_single_cf_forward(user_count, dim):
    """Builds the jitted equivalent of SingleCF.forward(mini_b) -> (H_u, H_i, H_j)."""
    d_o = dim // 4

    @jax.jit
    def forward(params, user, p_item, n_item):
        b = user.shape[0]
        # Item rows live at offset user_count inside the fused table.
        idx = jnp.concatenate(
            [user, p_item + user_count, n_item + user_count]).astype(jnp.int32)
        out = fused_bottom_mlp(idx, params["emb_table"], params["w1"],
                               params["b1"], params["w2"], params["b2"])
        out = out[:, :d_o]                                   # drop padded columns
        return out[:b], out[b:2 * b], out[2 * b:3 * b]

    return forward


def _reference_forward(params, user, p_item, n_item, user_count, d_o):
    """Plain-JAX reference mirroring the kernel's bf16-in / f32-accumulate math."""
    tbl = params["emb_table"].astype(jnp.float32)
    w1 = params["w1"].astype(jnp.float32)
    w2 = params["w2"].astype(jnp.float32)

    def mlp(idx):
        x = tbl[idx]
        h = jnp.maximum(x @ w1 + params["b1"], 0.0)
        h = h.astype(jnp.bfloat16).astype(jnp.float32)       # kernel casts hidden to bf16
        return (h @ w2 + params["b2"])[:, :d_o]

    return (mlp(user), mlp(p_item + user_count), mlp(n_item + user_count))


# ---------------------------------- main ------------------------------------ #

if __name__ == "__main__":
    USER_COUNT, ITEM_COUNT, DIM, BATCH = 512, 1024, 64, 128

    key = jax.random.PRNGKey(0)
    k_params, k_u, k_p, k_n = jax.random.split(key, 4)
    params = init_single_cf_params(k_params, USER_COUNT, ITEM_COUNT, DIM)

    user = jax.random.randint(k_u, (BATCH,), 0, USER_COUNT, dtype=jnp.int32)
    p_item = jax.random.randint(k_p, (BATCH,), 0, ITEM_COUNT, dtype=jnp.int32)
    n_item = jax.random.randint(k_n, (BATCH,), 0, ITEM_COUNT, dtype=jnp.int32)

    forward = make_single_cf_forward(USER_COUNT, DIM)
    h_u, h_i, h_j = forward(params, user, p_item, n_item)
    jax.block_until_ready((h_u, h_i, h_j))

    # Sanity check against plain-JAX reference (kernel output is bf16).
    r_u, r_i, r_j = _reference_forward(params, user, p_item, n_item,
                                       USER_COUNT, DIM // 4)
    assert h_u.shape == (BATCH, DIM // 4)
    assert h_i.shape == (BATCH, DIM // 4)
    assert h_j.shape == (BATCH, DIM // 4)
    assert jnp.allclose(h_u.astype(jnp.float32), r_u, atol=1e-2)
    assert jnp.allclose(h_i.astype(jnp.float32), r_i, atol=1e-2)
    assert jnp.allclose(h_j.astype(jnp.float32), r_j, atol=1e-2)

    print("KERNEL_OK")
</pallas_src>

<mosaic_0001>
module attributes {stable_mosaic.version = 11 : i64} {
  func.func @_fused_encoder_kernel(%arg0: i32, %arg1: memref<192x1xi32, #tpu.memory_space<vmem>>, %arg2: memref<1536x64xbf16, #tpu.memory_space<vmem>>, %arg3: memref<64x128xbf16, #tpu.memory_space<vmem>>, %arg4: memref<1x128xf32, #tpu.memory_space<vmem>>, %arg5: memref<128x128xbf16, #tpu.memory_space<vmem>>, %arg6: memref<1x128xf32, #tpu.memory_space<vmem>>, %arg7: memref<192x128xbf16, #tpu.memory_space<vmem>>) attributes {dimension_semantics = [#tpu.dimension_semantics<parallel>], iteration_bounds = array<i64: 2>, scalar_prefetch = 0 : i64, scratch_operands = 0 : i64, tpu.core_type = #tpu.core_type<tc>, window_params = [{transform_indices = @transform_0, window_bounds = array<i64: 192, 1>}, {pipeline_mode = #tpu.pipeline_mode<synchronous>, transform_indices = @transform_1, window_bounds = array<i64: 1536, 64>}, {pipeline_mode = #tpu.pipeline_mode<synchronous>, transform_indices = @transform_2, window_bounds = array<i64: 64, 128>}, {pipeline_mode = #tpu.pipeline_mode<synchronous>, transform_indices = @transform_3, window_bounds = array<i64: 1, 128>}, {pipeline_mode = #tpu.pipeline_mode<synchronous>, transform_indices = @transform_4, window_bounds = array<i64: 128, 128>}, {pipeline_mode = #tpu.pipeline_mode<synchronous>, transform_indices = @transform_5, window_bounds = array<i64: 1, 128>}, {transform_indices = @transform_6, window_bounds = array<i64: 192, 128>}]} {
    %c0 = arith.constant 0 : index
    %c0_0 = arith.constant 0 : index
    %0 = vector.load %arg1[%c0, %c0_0] : memref<192x1xi32, #tpu.memory_space<vmem>>, vector<192x1xi32>
    %1 = tpu.iota {dimensions = array<i32: 1>} : vector<192x1536xi32>
    %2 = vector.broadcast %0 : vector<192x1xi32> to vector<192x1536xi32>
    %3 = arith.cmpi eq, %2, %1 : vector<192x1536xi32>
    %cst = arith.constant 1.000000e+00 : f32
    %cst_1 = arith.constant 0.000000e+00 : f32
    %4 = vector.broadcast %cst : f32 to vector<192x1536xf32>
    %5 = vector.broadcast %cst_1 : f32 to vector<192x1536xf32>
    %6 = arith.select %3, %4, %5 : vector<192x1536xi1>, vector<192x1536xf32>
    %7 = arith.truncf %6 : vector<192x1536xf32> to vector<192x1536xbf16>
    %c0_2 = arith.constant 0 : index
    %c0_3 = arith.constant 0 : index
    %8 = vector.load %arg2[%c0_2, %c0_3] : memref<1536x64xbf16, #tpu.memory_space<vmem>>, vector<1536x64xbf16>
    %cst_4 = arith.constant dense<0.000000e+00> : vector<192x64xf32>
    %9 = tpu.matmul %7, %8, %cst_4 {dimension_numbers = #tpu.dot_dimension_numbers<[1], [0], [0], [1], [0, 0, 1, 1], [], []>} : vector<192x1536xbf16>, vector<1536x64xbf16>, vector<192x64xf32> -> vector<192x64xf32>
    %10 = arith.truncf %9 : vector<192x64xf32> to vector<192x64xbf16>
    %c0_5 = arith.constant 0 : index
    %c0_6 = arith.constant 0 : index
    %11 = vector.load %arg3[%c0_5, %c0_6] : memref<64x128xbf16, #tpu.memory_space<vmem>>, vector<64x128xbf16>
    %cst_7 = arith.constant dense<0.000000e+00> : vector<192x128xf32>
    %12 = tpu.matmul %10, %11, %cst_7 {dimension_numbers = #tpu.dot_dimension_numbers<[1], [0], [0], [1], [0, 0, 1, 1], [], []>} : vector<192x64xbf16>, vector<64x128xbf16>, vector<192x128xf32> -> vector<192x128xf32>
    %c0_8 = arith.constant 0 : index
    %c0_9 = arith.constant 0 : index
    %13 = vector.load %arg4[%c0_8, %c0_9] : memref<1x128xf32, #tpu.memory_space<vmem>>, vector<1x128xf32>
    %14 = vector.broadcast %13 : vector<1x128xf32> to vector<192x128xf32>
    %15 = arith.addf %12, %14 : vector<192x128xf32>
    %cst_10 = arith.constant 0.000000e+00 : f32
    %16 = vector.broadcast %cst_10 : f32 to vector<192x128xf32>
    %17 = arith.maximumf %15, %16 : vector<192x128xf32>
    %18 = arith.truncf %17 : vector<192x128xf32> to vector<192x128xbf16>
    %c0_11 = arith.constant 0 : index
    %c0_12 = arith.constant 0 : index
    %19 = vector.load %arg5[%c0_11, %c0_12] : memref<128x128xbf16, #tpu.memory_space<vmem>>, vector<128x128xbf16>
    %cst_13 = arith.constant dense<0.000000e+00> : vector<192x128xf32>
    %20 = tpu.matmul %18, %19, %cst_13 {dimension_numbers = #tpu.dot_dimension_numbers<[1], [0], [0], [1], [0, 0, 1, 1], [], []>} : vector<192x128xbf16>, vector<128x128xbf16>, vector<192x128xf32> -> vector<192x128xf32>
    %c0_14 = arith.constant 0 : index
    %c0_15 = arith.constant 0 : index
    %21 = vector.load %arg6[%c0_14, %c0_15] : memref<1x128xf32, #tpu.memory_space<vmem>>, vector<1x128xf32>
    %22 = vector.broadcast %21 : vector<1x128xf32> to vector<192x128xf32>
    %23 = arith.addf %20, %22 : vector<192x128xf32>
    %24 = arith.truncf %23 : vector<192x128xf32> to vector<192x128xbf16>
    %c0_16 = arith.constant 0 : index
    %c0_17 = arith.constant 0 : index
    %25 = vector.load %arg7[%c0_16, %c0_17] : memref<192x128xbf16, #tpu.memory_space<vmem>>, vector<192x128xbf16>
    tpu.vector_store %arg7[%c0_16, %c0_17], %24 {strides = array<i32>} : memref<192x128xbf16, #tpu.memory_space<vmem>>, vector<192x128xbf16>,
    return
  }
  func.func @transform_0(%arg0: i32) -> (i32, i32) {
    %c0_i32 = arith.constant 0 : i32
    %c0_i32_0 = arith.constant 0 : i32
    return %arg0, %c0_i32 : i32, i32
  }
  func.func @transform_1(%arg0: i32) -> (i32, i32) {
    %c0_i32 = arith.constant 0 : i32
    %c0_i32_0 = arith.constant 0 : i32
    %c0_i32_1 = arith.constant 0 : i32
    return %c0_i32, %c0_i32_0 : i32, i32
  }
  func.func @transform_2(%arg0: i32) -> (i32, i32) {
    %c0_i32 = arith.constant 0 : i32
    %c0_i32_0 = arith.constant 0 : i32
    %c0_i32_1 = arith.constant 0 : i32
    return %c0_i32, %c0_i32_0 : i32, i32
  }
  func.func @transform_3(%arg0: i32) -> (i32, i32) {
    %c0_i32 = arith.constant 0 : i32
    %c0_i32_0 = arith.constant 0 : i32
    %c0_i32_1 = arith.constant 0 : i32
    return %c0_i32, %c0_i32_0 : i32, i32
  }
  func.func @transform_4(%arg0: i32) -> (i32, i32) {
    %c0_i32 = arith.constant 0 : i32
    %c0_i32_0 = arith.constant 0 : i32
    %c0_i32_1 = arith.constant 0 : i32
    return %c0_i32, %c0_i32_0 : i32, i32
  }
  func.func @transform_5(%arg0: i32) -> (i32, i32) {
    %c0_i32 = arith.constant 0 : i32
    %c0_i32_0 = arith.constant 0 : i32
    %c0_i32_1 = arith.constant 0 : i32
    return %c0_i32, %c0_i32_0 : i32, i32
  }
  func.func @transform_6(%arg0: i32) -> (i32, i32) {
    %c0_i32 = arith.constant 0 : i32
    %c0_i32_0 = arith.constant 0 : i32
    return %arg0, %c0_i32 : i32, i32
  }
}

</mosaic_0001>

<bundles_post_ra>
// kernel: forward.1
= control target key start
LH: loop header
LB: loop body
LE: loop exit
PB: predicated region body
PF: predicated region fallthrough
CT: control target
= control target key end

     0   :  { %s4108_s21 = smov 0   ;;  %s5663_s0 = inlined_call_operand.vmem [shape: s32[384,1], index: 0, kind: input, shape index: {}]   ;;  %s5664_s1 = inlined_call_operand.vmem [shape: bf16[1536,64], index: 1, kind: input, shape index: {}]   ;;  %s5665_s2 = inlined_call_operand.vmem [shape: bf16[64,128], index: 2, kind: input, shape index: {}]   ;;  %s5666_s3 = inlined_call_operand.vmem [shape: f32[1,128], index: 3, kind: input, shape index: {}]   ;;  %s5667_s4 = inlined_call_operand.vmem [shape: bf16[128,128], index: 4, kind: input, shape index: {}]   ;;  %s5668_s5 = inlined_call_operand.vmem [shape: f32[1,128], index: 5, kind: input, shape index: {}]   ;;  %s5669_s6 = inlined_call_operand.vmem [shape: bf16[384,128], index: 6, kind: output, shape index: {}]  }
   0x1 LB: > { %s3112_s22 = sadd.s32 4294967295, %s4069_s21   ;;  %p3116_p0 = scmp.ge.s32.totalorder %s4069_s21, 1  ;;  %s4069_s21 = sphi %s4108_s21, %s16_s21  }
   0x2   : > { %p213_p1 = scmp.lt.s32.totalorder %s4069_s21, 3 }
   0x4   : > { %p214_p2 = pnand %p3116_p0, %p213_p1 }
   0x5   : > { %s243_s23 = smul.u32 (!%p214_p2), 24, %s3112_s22 }
   0x6   : > { %217 = sbr.rel (%p214_p2) target bundleno = 1222 (0x4c6), region = 44 }
   0x7   : > { %p244_p3 = scmp.lt.s32.totalorder (!%p214_p2), %s243_s23, 47 }
   0xb   : > { %v4071_v0 = vmov 0   ;;  %s5671_s23 = smov (!%p244_p3, %s243_s23), 47  ;;  %v3860_v25 = vld [vmem:[%s5664_s1 + $0x38] sm:$0xff]  ;;  %v3859_v27 = vld [vmem:[%s5664_s1 + $0x30] sm:$0xff]  ;;  %v3858_v29 = vld [vmem:[%s5664_s1 + $0x28] sm:$0xff]  ;;  %v280_v45 = vlaneseq }
   0xc   : > { %4060 = vset.pattern.permute.xlu2 %v4071_v0  ;;  %4059 = vset.pattern.permute.xlu1 %v4071_v0  ;;  %s3117_s24 = sshll.u32 %s5671_s23, 3  ;;  %v3868_v26 = vld [vmem:[%s5664_s1 + $0x78] sm:$0xff]  ;;  %v3867_v28 = vld [vmem:[%s5664_s1 + $0x70] sm:$0xff]  ;;  %v3866_v30 = vld [vmem:[%s5664_s1 + $0x68] sm:$0xff]  ;;  %v4072_v55 = vmov 1.0|1.0  }
   0xd   : > { %4058 = vset.pattern.permute.xlu0 %v4071_v0  ;;  %s4122_s27 = scalar_lea.vmem %s5663_s0, %s3117_s24  ;;  %4032 = vmatpush.bf16.msra.mxu2 %v3860_v25  ;;  %v3857_v31 = vld [vmem:[%s5664_s1 + $0x20] sm:$0xff]  ;;  %v3856_v33 = vld [vmem:[%s5664_s1 + $0x18] sm:$0xff]  ;;  %v3855_v35 = vld [vmem:[%s5664_s1 + $0x10] sm:$0xff]  ;;  %v4212_v48 = vand.u32 127, %v280_v45  ;;  %s3118_s28 = sshll.u32 %s5671_s23, 2 }
   0xe   : > { %v272_v1 = vld [vmem:[%s4122_s27 + $0x80] sm:$0xff]  ;;  %v270_v2 = vld [vmem:[%s4122_s27 + $0x70] sm:$0xff]  ;;  %v273_v4 = vld [vmem:[%s4122_s27 + $0x88] sm:$0xff]  ;;  %4040 = vmatpush.bf16.msra.mxu3 %v3868_v26  ;;  %1853 = vmatpush.bf16.msra.mxu0 %v3860_v25  ;;  %s5618_s7 = scalar_lea.vmem %s5669_s6, %s3118_s28 }
   0xf   : > { %v268_v3 = vld [vmem:[%s4122_s27 + $0x60] sm:$0xff]  ;;  %342 = vperm.xlu2 %4060, %v272_v1   ;;  %336 = vperm.xlu1 %4059, %v270_v2   ;;  %v271_v5 = vld [vmem:[%s4122_s27 + $0x78] sm:$0xff]  ;;  %v269_v6 = vld [vmem:[%s4122_s27 + $0x68] sm:$0xff]  ;;  %v4221_v51 = vadd.s32 128, %v4212_v48  ;;  %v4510_v45 = vadd.s32 512, %v4212_v48 }
  0x10   : > { %330 = vperm.xlu0 %4058, %v268_v3   ;;  %v276_v7 = vld [vmem:[%s4122_s27 + $0xa0] sm:$0xff]  ;;  %v275_v8 = vld [vmem:[%s4122_s27 + $0x98] sm:$0xff]  ;;  %v274_v9 = vld [vmem:[%s4122_s27 + $0x90] sm:$0xff]  ;;  %1922 = vmatpush.bf16.msra.mxu1 %v3868_v26 }
  0x11   : > { %v279_v10 = vld [vmem:[%s4122_s27 + $0xb8] sm:$0xff]  ;;  %v278_v11 = vld [vmem:[%s4122_s27 + $0xb0] sm:$0xff]  ;;  %v277_v12 = vld [vmem:[%s4122_s27 + $0xa8] sm:$0xff]  ;;  %4033 = vmatpush.bf16.msra.mxu2 %v3859_v27 }
  0x12   : > { %v258_v13 = vld [vmem:[%s4122_s27 + $0x10] sm:$0xff]  ;;  %v257_v14 = vld [vmem:[%s4122_s27 + $0x8] sm:$0xff]  ;;  %v256_v15 = vld [vmem:[%s4122_s27] sm:$0xff]  ;;  %4041 = vmatpush.bf16.msra.mxu3 %v3867_v28  ;;  %1854 = vmatpush.bf16.msra.mxu0 %v3859_v27 }
  0x13   : > { %v261_v16 = vld [vmem:[%s4122_s27 + $0x28] sm:$0xff]  ;;  %v260_v17 = vld [vmem:[%s4122_s27 + $0x20] sm:$0xff]  ;;  %v259_v18 = vld [vmem:[%s4122_s27 + $0x18] sm:$0xff] }
  0x14   : > { %v264_v19 = vld [vmem:[%s4122_s27 + $0x40] sm:$0xff]  ;;  %v263_v20 = vld [vmem:[%s4122_s27 + $0x38] sm:$0xff]  ;;  %v262_v21 = vld [vmem:[%s4122_s27 + $0x30] sm:$0xff]  ;;  %1923 = vmatpush.bf16.msra.mxu1 %v3867_v28 }
  0x15   : > { %v267_v22 = vld [vmem:[%s4122_s27 + $0x58] sm:$0xff]  ;;  %v266_v23 = vld [vmem:[%s4122_s27 + $0x50] sm:$0xff]  ;;  %v265_v24 = vld [vmem:[%s4122_s27 + $0x48] sm:$0xff]  ;;  %4034 = vmatpush.bf16.msra.mxu2 %v3858_v29 }
  0x16   : > { %4042 = vmatpush.bf16.msra.mxu3 %v3866_v30  ;;  %v3865_v32 = vld [vmem:[%s5664_s1 + $0x60] sm:$0xff]  ;;  %1855 = vmatpush.bf16.msra.mxu0 %v3858_v29  ;;  %v3864_v34 = vld [vmem:[%s5664_s1 + $0x58] sm:$0xff]  ;;  %v3863_v36 = vld [vmem:[%s5664_s1 + $0x50] sm:$0xff] }
  0x17   : > { %345 = vperm.xlu2 %4060, %v273_v4   ;;  %339 = vperm.xlu1 %4059, %v271_v5   ;;  %v3854_v37 = vld [vmem:[%s5664_s1 + $0x8] sm:$0xff]  ;;  %v3853_v39 = vld [vmem:[%s5664_s1] sm:$0xff]  ;;  %v3876_v41 = vld [vmem:[%s5664_s1 + $0xb8] sm:$0xff] }
  0x18   : > { %333 = vperm.xlu0 %4058, %v269_v6   ;;  %1924 = vmatpush.bf16.msra.mxu1 %v3866_v30  ;;  %v3862_v38 = vld [vmem:[%s5664_s1 + $0x48] sm:$0xff]  ;;  %v3861_v40 = vld [vmem:[%s5664_s1 + $0x40] sm:$0xff]  ;;  %v3884_v42 = vld [vmem:[%s5664_s1 + $0xf8] sm:$0xff] }
  0x19   : > { %4035 = vmatpush.bf16.msra.mxu2 %v3857_v31  ;;  %v3875_v43 = vld [vmem:[%s5664_s1 + $0xb0] sm:$0xff]  ;;  %v3874_v49 = vld [vmem:[%s5664_s1 + $0xa8] sm:$0xff]  ;;  %v3873_v56 = vld [vmem:[%s5664_s1 + $0xa0] sm:$0xff] }
  0x1a   : > { %4043 = vmatpush.bf16.msra.mxu3 %v3865_v32  ;;  %1856 = vmatpush.bf16.msra.mxu0 %v3857_v31  ;;  %v3883_v44 = vld [vmem:[%s5664_s1 + $0xf0] sm:$0xff]  ;;  %v3882_v50 = vld [vmem:[%s5664_s1 + $0xe8] sm:$0xff]  ;;  %v3881_v59 = vld [vmem:[%s5664_s1 + $0xe0] sm:$0xff] }
  0x1b   : > { %v3872_v0 = vld [vmem:[%s5664_s1 + $0x98] sm:$0xff]  ;;  %v3871_v4 = vld [vmem:[%s5664_s1 + $0x90] sm:$0xff]  ;;  %v3889_v25 = vld [vmem:[%s5664_s1 + $0x120] sm:$0xff] }
  0x1c   : > { %1925 = vmatpush.bf16.msra.mxu1 %v3865_v32  ;;  %v3880_v1 = vld [vmem:[%s5664_s1 + $0xd8] sm:$0xff]  ;;  %v3879_v5 = vld [vmem:[%s5664_s1 + $0xd0] sm:$0xff]  ;;  %v3897_v26 = vld [vmem:[%s5664_s1 + $0x160] sm:$0xff] }
  0x1d   : > { %4036 = vmatpush.bf16.msra.mxu2 %v3856_v33  ;;  %v3888_v27 = vld [vmem:[%s5664_s1 + $0x118] sm:$0xff]  ;;  %v3887_v29 = vld [vmem:[%s5664_s1 + $0x110] sm:$0xff]  ;;  %v3886_v32 = vld [vmem:[%s5664_s1 + $0x108] sm:$0xff] }
  0x1e   : > { %4044 = vmatpush.bf16.msra.mxu3 %v3864_v34  ;;  %1857 = vmatpush.bf16.msra.mxu0 %v3856_v33  ;;  %v3896_v28 = vld [vmem:[%s5664_s1 + $0x158] sm:$0xff]  ;;  %v3895_v30 = vld [vmem:[%s5664_s1 + $0x150] sm:$0xff]  ;;  %v3894_v33 = vld [vmem:[%s5664_s1 + $0x148] sm:$0xff] }
  0x1f   : > { %354 = vperm.xlu2 %4060, %v276_v7   ;;  %351 = vperm.xlu1 %4059, %v275_v8  }
  0x20   : > { %348 = vperm.xlu0 %4058, %v274_v9   ;;  %1926 = vmatpush.bf16.msra.mxu1 %v3864_v34  ;;  %v3870_v9 = vld [vmem:[%s5664_s1 + $0x88] sm:$0xff]  ;;  %v3885_v34 = vld [vmem:[%s5664_s1 + $0x100] sm:$0xff] }
  0x21   : > { %4037 = vmatpush.bf16.msra.mxu2 %v3855_v35 }
  0x22   : > { %4045 = vmatpush.bf16.msra.mxu3 %v3863_v36  ;;  %1858 = vmatpush.bf16.msra.mxu0 %v3855_v35  ;;  %v3893_v35 = vld [vmem:[%s5664_s1 + $0x140] sm:$0xff] }
  0x24   : > { %1927 = vmatpush.bf16.msra.mxu1 %v3863_v36 }
  0x25   : > { %4038 = vmatpush.bf16.msra.mxu2 %v3854_v37 }
  0x26   : > { %4046 = vmatpush.bf16.msra.mxu3 %v3862_v38  ;;  %1859 = vmatpush.bf16.msra.mxu0 %v3854_v37  ;;  %v3907_v37 = vld [vmem:[%s5664_s1 + $0x1b0] sm:$0xff] }
  0x27   : > { %363 = vperm.xlu2 %4060, %v279_v10   ;;  %360 = vperm.xlu1 %4059, %v278_v11   ;;  %v3878_v10 = vld [vmem:[%s5664_s1 + $0xc8] sm:$0xff] }
  0x28   : > { %357 = vperm.xlu0 %4058, %v277_v12   ;;  %1928 = vmatpush.bf16.msra.mxu1 %v3862_v38  ;;  %v3869_v12 = vld [vmem:[%s5664_s1 + $0x80] sm:$0xff]  ;;  %v3915_v38 = vld [vmem:[%s5664_s1 + $0x1f0] sm:$0xff] }
  0x29   : > { %4039 = vmatpush.bf16.msra.mxu2 %v3853_v39 }
  0x2a   : > { %4047 = vmatpush.bf16.msra.mxu3 %v3861_v40  ;;  %1860 = vmatpush.bf16.msra.mxu0 %v3853_v39  ;;  %v4464_v39 = vadd.s32 256, %v4212_v48 }
  0x2c   : > { %1929 = vmatpush.bf16.msra.mxu1 %v3861_v40  ;;  %v4467_v40 = vadd.s32 384, %v4212_v48 }
  0x2d   : > { %1991 = vmatpush.bf16.msrb.mxu2 %v3876_v41 }
  0x2e   : > { %2060 = vmatpush.bf16.msrb.mxu3 %v3884_v42 }
  0x2f   : > { %300 = vperm.xlu2 %4060, %v258_v13   ;;  %297 = vperm.xlu1 %4059, %v257_v14   ;;  %v3877_v13 = vld [vmem:[%s5664_s1 + $0xc0] sm:$0xff] }
  0x30   : > { %294 = vperm.xlu0 %4058, %v256_v15   ;;  %v3892_v15 = vld [vmem:[%s5664_s1 + $0x138] sm:$0xff] }
  0x31   : > { %1992 = vmatpush.bf16.msrb.mxu2 %v3875_v43  ;;  %2129 = vmatpush.bf16.msrb.mxu0 %v3892_v15  ;;  %v3906_v43 = vld [vmem:[%s5664_s1 + $0x1a8] sm:$0xff] }
  0x32   : > { %2061 = vmatpush.bf16.msrb.mxu3 %v3883_v44  ;;  %v3914_v44 = vld [vmem:[%s5664_s1 + $0x1e8] sm:$0xff] }
  0x35   : > { %1993 = vmatpush.bf16.msrb.mxu2 %v3874_v49  ;;  %v4513_v49 = vadd.s32 640, %v4212_v48 }
  0x36   : > { %2062 = vmatpush.bf16.msrb.mxu3 %v3882_v50 }
  0x37   : > { %309 = vperm.xlu2 %4060, %v261_v16   ;;  %306 = vperm.xlu1 %4059, %v260_v17   ;;  %v3900_v16 = vld [vmem:[%s5664_s1 + $0x178] sm:$0xff]  ;;  %v3891_v17 = vld [vmem:[%s5664_s1 + $0x130] sm:$0xff] }
  0x38   : > { %303 = vperm.xlu0 %4058, %v259_v18   ;;  %2198 = vmatpush.bf16.msrb.mxu1 %v3900_v16  ;;  %v3899_v18 = vld [vmem:[%s5664_s1 + $0x170] sm:$0xff] }
  0x39   : > { %1994 = vmatpush.bf16.msrb.mxu2 %v3873_v56  ;;  %2130 = vmatpush.bf16.msrb.mxu0 %v3891_v17 }
  0x3a   : > { %2063 = vmatpush.bf16.msrb.mxu3 %v3881_v59  ;;  %v3905_v59 = vld [vmem:[%s5664_s1 + $0x1a0] sm:$0xff] }
  0x3c   : > { %2199 = vmatpush.bf16.msrb.mxu1 %v3899_v18 }
  0x3d   : > { %1995 = vmatpush.bf16.msrb.mxu2 %v3872_v0  ;;  %v3913_v0 = vld [vmem:[%s5664_s1 + $0x1e0] sm:$0xff] }
  0x3e   : > { %2064 = vmatpush.bf16.msrb.mxu3 %v3880_v1 }
  0x3f   : > { %318 = vperm.xlu2 %4060, %v264_v19   ;;  %315 = vperm.xlu1 %4059, %v263_v20  }
  0x40   : > { %312 = vperm.xlu0 %4058, %v262_v21   ;;  %v3908_v21 = vld [vmem:[%s5664_s1 + $0x1b8] sm:$0xff] }
  0x41   : > { %1996 = vmatpush.bf16.msrb.mxu2 %v3871_v4 }
  0x42   : > { %2065 = vmatpush.bf16.msrb.mxu3 %v3879_v5 }
  0x45   : > { %1997 = vmatpush.bf16.msrb.mxu2 %v3870_v9 }
  0x46   : > { %2066 = vmatpush.bf16.msrb.mxu3 %v3878_v10 }
  0x47   : > { %327 = vperm.xlu2 %4060, %v267_v22   ;;  %324 = vperm.xlu1 %4059, %v266_v23   ;;  %v3890_v22 = vld [vmem:[%s5664_s1 + $0x128] sm:$0xff] }
  0x48   : > { %321 = vperm.xlu0 %4058, %v265_v24   ;;  %v3898_v23 = vld [vmem:[%s5664_s1 + $0x168] sm:$0xff]  ;;  %v3916_v24 = vld [vmem:[%s5664_s1 + $0x1f8] sm:$0xff]  ;;  %2131 = vmatpush.bf16.msrb.mxu0 %v3890_v22 }
  0x49   : > { %1998 = vmatpush.bf16.msrb.mxu2 %v3869_v12  ;;  %2200 = vmatpush.bf16.msrb.mxu1 %v3898_v23 }
  0x4a   : > { %2067 = vmatpush.bf16.msrb.mxu3 %v3877_v13 }
  0x4c   : > { %2132 = vmatpush.bf16.msrb.mxu0 %v3889_v25  ;;  %v3904_v25 = vld [vmem:[%s5664_s1 + $0x198] sm:$0xff] }
  0x4d   : > { %2201 = vmatpush.bf16.msrb.mxu1 %v3897_v26  ;;  %v3912_v26 = vld [vmem:[%s5664_s1 + $0x1d8] sm:$0xff] }
  0x50   : > { %2133 = vmatpush.bf16.msrb.mxu0 %v3888_v27 }
  0x51   : > { %2202 = vmatpush.bf16.msrb.mxu1 %v3896_v28 }
  0x54   : > { %2134 = vmatpush.bf16.msrb.mxu0 %v3887_v29 }
  0x55   : > { %2203 = vmatpush.bf16.msrb.mxu1 %v3895_v30 }
  0x58   : > { %2135 = vmatpush.bf16.msrb.mxu0 %v3886_v32 }
  0x59   : > { %2204 = vmatpush.bf16.msrb.mxu1 %v3894_v33 }
  0x5c   : > { %2136 = vmatpush.bf16.msrb.mxu0 %v3885_v34 }
  0x5d   : > { %2205 = vmatpush.bf16.msrb.mxu1 %v3893_v35 }
  0x69   : > { %v4225_v53 = vpop.permute.xlu2 %342 }
  0x71   : > { %v4249_v60 = vpop.permute.xlu2 %345 }
  0x79   : > { %v4264_v63 = vpop.permute.xlu2 %354 }
  0x81   : > { %v4208_v46 = vpop.permute.xlu1 %336  ;;  %v4293_v6 = vpop.permute.xlu2 %363 }
  0x82   : > { %v4210_v47 = vpop.permute.xlu0 %330  ;;  %vm533_vm6 = vcmp.eq.s32.totalorder %v4208_v46, %v4212_v48  ;;  %vm534_vm8 = vcmp.eq.s32.totalorder %v4208_v46, %v4221_v51 }
  0x83   : > { %vm509_vm0 = vcmp.eq.s32.totalorder %v4210_v47, %v4212_v48  ;;  %vm510_vm4 = vcmp.eq.s32.totalorder %v4210_v47, %v4221_v51 }
  0x89   : > { %v4223_v52 = vpop.permute.xlu1 %339  ;;  %v4309_v8 = vpop.permute.xlu2 %300 }
  0x8a   : > { %v4227_v54 = vpop.permute.xlu0 %333  ;;  %vm545_vm7 = vcmp.eq.s32.totalorder %v4223_v52, %v4212_v48  ;;  %vm546_vm9 = vcmp.eq.s32.totalorder %v4223_v52, %v4221_v51 }
  0x8b   : > { %vm521_vm1 = vcmp.eq.s32.totalorder %v4227_v54, %v4212_v48  ;;  %vm522_vm2 = vcmp.eq.s32.totalorder %v4227_v54, %v4221_v51  ;;  %vm3517_vm10 = vmpackc.low %vm545_vm7, %vm533_vm6 }
  0x8c   : > { %vm3515_vm3 = vmpackc.low %vm521_vm1, %vm509_vm0 }
  0x8d   : > { %3516 = vmatmul.msk.bf16.vlgmr.msra.gmra.mxu2 %vm3515_vm3, %v4072_v55  ;;  %vm3539_vm5 = vmpackc.low %vm522_vm2, %vm510_vm4  ;;  %vm557_vm2 = vcmp.eq.s32.totalorder %v4225_v53, %v4212_v48  ;;  %vm569_vm3 = vcmp.eq.s32.totalorder %v4249_v60, %v4212_v48  ;;  %vm558_vm4 = vcmp.eq.s32.totalorder %v4225_v53, %v4221_v51 }
  0x8e   : > { %3540 = vmatmul.msk.bf16.vlgmr.msra.gmra.mxu3 %vm3539_vm5, %v4072_v55  ;;  %vm3541_vm11 = vmpackc.low %vm546_vm9, %vm534_vm8  ;;  %vm570_vm5 = vcmp.eq.s32.totalorder %v4249_v60, %v4221_v51  ;;  %2267 = vmatpush.bf16.msra.mxu2 %v3908_v21 }
  0x8f   : > { %vm3519_vm6 = vmpackc.low %vm569_vm3, %vm557_vm2  ;;  %2336 = vmatpush.bf16.msra.mxu3 %v3916_v24 }
  0x90   : > { %vm3543_vm7 = vmpackc.low %vm570_vm5, %vm558_vm4 }
  0x91   : > { %v4242_v57 = vpop.permute.xlu1 %351  ;;  %v4345_v14 = vpop.permute.xlu2 %309 }
  0x92   : > { %v4244_v58 = vpop.permute.xlu0 %348  ;;  %2268 = vmatpush.bf16.msra.mxu2 %v3907_v37 }
  0x93   : > { %2337 = vmatpush.bf16.msra.mxu3 %v3915_v38 }
  0x96   : > { %2269 = vmatpush.bf16.msra.mxu2 %v3906_v43 }
  0x97   : > { %2338 = vmatpush.bf16.msra.mxu3 %v3914_v44 }
  0x99   : > { %v4251_v61 = vpop.permute.xlu1 %360  ;;  %v4447_v36 = vpop.permute.xlu2 %318 }
  0x9a   : > { %v4257_v62 = vpop.permute.xlu0 %357  ;;  %2270 = vmatpush.bf16.msra.mxu2 %v3905_v59 }
  0x9b   : > { %2339 = vmatpush.bf16.msra.mxu3 %v3913_v0 }
  0x9d   : > { %3518 = vmatmul.msk.bf16.gmra.mxu2 %vm3517_vm10, %v4072_v55  ;;  %vm389_vm10 = vcmp.eq.s32.totalorder %v4309_v8, %v4212_v48 }
  0x9e   : > { %3542 = vmatmul.msk.bf16.gmra.mxu3 %vm3541_vm11, %v4072_v55  ;;  %2271 = vmatpush.bf16.msra.mxu2 %v3904_v25 }
  0x9f   : > { %2340 = vmatpush.bf16.msra.mxu3 %v3912_v26 }
  0xa1   : > { %v4273_v2 = vpop.permute.xlu1 %297  ;;  %v4481_v42 = vpop.permute.xlu2 %327 }
  0xa2   : > { %v4275_v3 = vpop.permute.xlu0 %294  ;;  %vm377_vm12 = vcmp.eq.s32.totalorder %v4273_v2, %v4212_v48  ;;  %vm378_vm13 = vcmp.eq.s32.totalorder %v4273_v2, %v4221_v51 }
  0xa3   : > { %vm365_vm14 = vcmp.eq.s32.totalorder %v4275_v3, %v4212_v48  ;;  %vm366_vm15 = vcmp.eq.s32.totalorder %v4275_v3, %v4221_v51 }
  0xa4   : > { %vm3503_vm0 = vmpackc.low %vm377_vm12, %vm365_vm14  ;;  %vm390_vm12 = vcmp.eq.s32.totalorder %v4309_v8, %v4221_v51  ;;  %vm581_vm14 = vcmp.eq.s32.totalorder %v4244_v58, %v4212_v48 }
  0xa5   : > { %3504 = vmatmul.msk.bf16.vlgmr.msra.gmra.mxu0 %vm3503_vm0, %v4072_v55  ;;  %vm3527_vm1 = vmpackc.low %vm378_vm13, %vm366_vm15  ;;  %vm593_vm15 = vcmp.eq.s32.totalorder %v4242_v57, %v4212_v48  ;;  %vm582_vm0 = vcmp.eq.s32.totalorder %v4244_v58, %v4221_v51 }
  0xa6   : > { %3528 = vmatmul.msk.bf16.vlgmr.msra.gmra.mxu1 %vm3527_vm1, %v4072_v55  ;;  %vm594_vm1 = vcmp.eq.s32.totalorder %v4242_v57, %v4221_v51  ;;  %vm3521_vm2 = vmpackc.low %vm593_vm15, %vm581_vm14 }
  0xa7   : > { %vm3545_vm3 = vmpackc.low %vm594_vm1, %vm582_vm0 }
  0xa9   : > { %v4334_v11 = vpop.permute.xlu1 %306 }
  0xaa   : > { %v4304_v7 = vpop.permute.xlu0 %303  ;;  %vm413_vm4 = vcmp.eq.s32.totalorder %v4334_v11, %v4212_v48  ;;  %vm414_vm5 = vcmp.eq.s32.totalorder %v4334_v11, %v4221_v51 }
  0xab   : > { %vm401_vm8 = vcmp.eq.s32.totalorder %v4304_v7, %v4212_v48  ;;  %vm402_vm9 = vcmp.eq.s32.totalorder %v4304_v7, %v4221_v51 }
  0xac   : > { %vm3505_vm11 = vmpackc.low %vm401_vm8, %vm389_vm10  ;;  %vm426_vm8 = vcmp.eq.s32.totalorder %v4345_v14, %v4221_v51  ;;  %vm605_vm10 = vcmp.eq.s32.totalorder %v4264_v63, %v4212_v48 }
  0xad   : > { %3520 = vmatmul.msk.bf16.gmra.mxu2 %vm3519_vm6, %v4072_v55  ;;  %vm3529_vm13 = vmpackc.low %vm402_vm9, %vm390_vm12  ;;  %vm425_vm6 = vcmp.eq.s32.totalorder %v4345_v14, %v4212_v48  ;;  %vm606_vm12 = vcmp.eq.s32.totalorder %v4264_v63, %v4221_v51 }
  0xae   : > { %3544 = vmatmul.msk.bf16.gmra.mxu3 %vm3543_vm7, %v4072_v55  ;;  %vm3507_vm7 = vmpackc.low %vm425_vm6, %vm413_vm4  ;;  %vm629_vm6 = vcmp.eq.s32.totalorder %v4251_v61, %v4212_v48 }
  0xaf   : > { %vm3531_vm9 = vmpackc.low %vm426_vm8, %vm414_vm5  ;;  %vm630_vm8 = vcmp.eq.s32.totalorder %v4251_v61, %v4221_v51 }
  0xb1   : > { %v4376_v19 = vpop.permute.xlu1 %315 }
  0xb2   : > { %v4378_v20 = vpop.permute.xlu0 %312  ;;  %vm449_vm1 = vcmp.eq.s32.totalorder %v4376_v19, %v4212_v48 }
  0xb3   : > { %vm437_vm0 = vcmp.eq.s32.totalorder %v4378_v20, %v4212_v48 }
  0xb4   : > { %vm3509_vm4 = vmpackc.low %vm449_vm1, %vm437_vm0  ;;  %vm462_vm0 = vcmp.eq.s32.totalorder %v4447_v36, %v4221_v51 }
  0xb5   : > { %3506 = vmatmul.msk.bf16.gmra.mxu0 %vm3505_vm11, %v4072_v55  ;;  %vm617_vm11 = vcmp.eq.s32.totalorder %v4257_v62, %v4212_v48 }
  0xb6   : > { %3530 = vmatmul.msk.bf16.gmra.mxu1 %vm3529_vm13, %v4072_v55  ;;  %vm618_vm13 = vcmp.eq.s32.totalorder %v4257_v62, %v4221_v51  ;;  %vm3523_vm14 = vmpackc.low %vm617_vm11, %vm605_vm10 }
  0xb7   : > { %vm3547_vm15 = vmpackc.low %vm618_vm13, %vm606_vm12 }
  0xb9   : > { %v4478_v41 = vpop.permute.xlu1 %324 }
  0xba   : > { %v4430_v31 = vpop.permute.xlu0 %321 }
  0xbb   : > { %vm473_vm12 = vcmp.eq.s32.totalorder %v4430_v31, %v4212_v48  ;;  %vm474_vm13 = vcmp.eq.s32.totalorder %v4430_v31, %v4221_v51 }
  0xbc   : > { %vm3535_vm1 = vmpackc.low %vm474_vm13, %vm462_vm0  ;;  %vm391_vm0 = vcmp.eq.s32.totalorder %v4309_v8, %v4464_v39 }
  0xbd   : > { %3522 = vmatmul.msk.bf16.gmra.mxu2 %vm3521_vm2, %v4072_v55  ;;  %vm438_vm2 = vcmp.eq.s32.totalorder %v4378_v20, %v4221_v51 }
  0xbe   : > { %3546 = vmatmul.msk.bf16.gmra.mxu3 %vm3545_vm3, %v4072_v55  ;;  %vm450_vm3 = vcmp.eq.s32.totalorder %v4376_v19, %v4221_v51 }
  0xbf   : > { %vm3533_vm5 = vmpackc.low %vm450_vm3, %vm438_vm2  ;;  %vm367_vm2 = vcmp.eq.s32.totalorder %v4275_v3, %v4464_v39  ;;  %vm379_vm3 = vcmp.eq.s32.totalorder %v4273_v2, %v4464_v39 }
  0xc5   : > { %3508 = vmatmul.msk.bf16.gmra.mxu0 %vm3507_vm7, %v4072_v55  ;;  %vm641_vm7 = vcmp.eq.s32.totalorder %v4293_v6, %v4212_v48 }
  0xc6   : > { %3532 = vmatmul.msk.bf16.gmra.mxu1 %vm3531_vm9, %v4072_v55  ;;  %vm642_vm9 = vcmp.eq.s32.totalorder %v4293_v6, %v4221_v51  ;;  %vm3525_vm10 = vmpackc.low %vm641_vm7, %vm629_vm6 }
  0xc7   : > { %vm3549_vm11 = vmpackc.low %vm642_vm9, %vm630_vm8  ;;  %vm485_vm8 = vcmp.eq.s32.totalorder %v4478_v41, %v4212_v48  ;;  %vm486_vm9 = vcmp.eq.s32.totalorder %v4478_v41, %v4221_v51 }
  0xc8   : > { %vm3551_vm6 = vmpackc.low %vm379_vm3, %vm367_vm2  ;;  %vm392_vm2 = vcmp.eq.s32.totalorder %v4309_v8, %v4467_v40 }
  0xcd   : > { %3524 = vmatmul.msk.bf16.gmra.mxu2 %vm3523_vm14, %v4072_v55  ;;  %vm461_vm14 = vcmp.eq.s32.totalorder %v4447_v36, %v4212_v48 }
  0xce   : > { %3548 = vmatmul.msk.bf16.gmra.mxu3 %vm3547_vm15, %v4072_v55  ;;  %vm3511_vm15 = vmpackc.low %vm473_vm12, %vm461_vm14  ;;  %vm498_vm12 = vcmp.eq.s32.totalorder %v4481_v42, %v4221_v51  ;;  %vm403_vm14 = vcmp.eq.s32.totalorder %v4304_v7, %v4464_v39 }
  0xcf   : > { %vm3537_vm13 = vmpackc.low %vm498_vm12, %vm486_vm9  ;;  %vm427_vm12 = vcmp.eq.s32.totalorder %v4345_v14, %v4464_v39 }
  0xd5   : > { %3510 = vmatmul.msk.bf16.gmra.mxu0 %vm3509_vm4, %v4072_v55  ;;  %vm368_vm4 = vcmp.eq.s32.totalorder %v4275_v3, %v4467_v40 }
  0xd6   : > { %3534 = vmatmul.msk.bf16.gmra.mxu1 %vm3533_vm5, %v4072_v55  ;;  %vm380_vm5 = vcmp.eq.s32.totalorder %v4273_v2, %v4467_v40 }
  0xd7   : > { %vm3575_vm7 = vmpackc.low %vm380_vm5, %vm368_vm4  ;;  %vm369_vm4 = vcmp.eq.s32.totalorder %v4275_v3, %v4510_v45  ;;  %vm381_vm5 = vcmp.eq.s32.totalorder %v4273_v2, %v4510_v45 }
  0xdd   : > { %3526 = vmatmul.msk.bf16.gmra.mxu2 %vm3525_vm10, %v4072_v55  ;;  %vm497_vm10 = vcmp.eq.s32.totalorder %v4481_v42, %v4212_v48 }
  0xde   : > { %3550 = vmatmul.msk.bf16.gmra.mxu3 %vm3549_vm11, %v4072_v55  ;;  %vm3513_vm11 = vmpackc.low %vm497_vm10, %vm485_vm8  ;;  %vm415_vm10 = vcmp.eq.s32.totalorder %v4334_v11, %v4464_v39 }
  0xdf   : > { %vm3599_vm8 = vmpackc.low %vm381_vm5, %vm369_vm4  ;;  %vm394_vm4 = vcmp.eq.s32.totalorder %v4309_v8, %v4513_v49 }
  0xe5   : > { %3512 = vmatmul.msk.bf16.gmra.mxu0 %vm3511_vm15, %v4072_v55  ;;  %vm404_vm15 = vcmp.eq.s32.totalorder %v4304_v7, %v4467_v40 }
  0xe6   : > { %3536 = vmatmul.msk.bf16.gmra.mxu1 %vm3535_vm1, %v4072_v55  ;;  %vm3553_vm1 = vmpackc.low %vm403_vm14, %vm391_vm0  ;;  %vm428_vm14 = vcmp.eq.s32.totalorder %v4345_v14, %v4467_v40  ;;  %vm405_vm0 = vcmp.eq.s32.totalorder %v4304_v7, %v4510_v45 }
  0xe7   : > { %vm3577_vm3 = vmpackc.low %vm404_vm15, %vm392_vm2  ;;  %vm393_vm2 = vcmp.eq.s32.totalorder %v4309_v8, %v4510_v45 }
  0xed   : > { %3552 = vmatmul.msk.bf16.vlgmr.msrb.gmra.mxu2 %vm3551_vm6, %v4072_v55  ;;  %vm370_vm6 = vcmp.eq.s32.totalorder %v4275_v3, %v4513_v49 }
  0xee   : > { %3576 = vmatmul.msk.bf16.vlgmr.msrb.gmra.mxu3 %vm3575_vm7, %v4072_v55  ;;  %vm382_vm7 = vcmp.eq.s32.totalorder %v4273_v2, %v4513_v49 }
  0xef   : > { %vm3623_vm9 = vmpackc.low %vm382_vm7, %vm370_vm6  ;;  %vm439_vm6 = vcmp.eq.s32.totalorder %v4378_v20, %v4464_v39  ;;  %vm451_vm7 = vcmp.eq.s32.totalorder %v4376_v19, %v4464_v39 }
  0xf5   : > { %3514 = vmatmul.msk.bf16.gmra.mxu0 %vm3513_vm11, %v4072_v55  ;;  %vm416_vm11 = vcmp.eq.s32.totalorder %v4334_v11, %v4467_v40 }
  0xf6   : > { %3538 = vmatmul.msk.bf16.gmra.mxu1 %vm3537_vm13, %v4072_v55  ;;  %vm3555_vm13 = vmpackc.low %vm427_vm12, %vm415_vm10  ;;  %vm417_vm12 = vcmp.eq.s32.totalorder %v4334_v11, %v4510_v45 }
  0xf7   : > { %vm3579_vm15 = vmpackc.low %vm428_vm14, %vm416_vm11  ;;  %vm429_vm14 = vcmp.eq.s32.totalorder %v4345_v14, %v4510_v45 }
  0xf8   : > { %vm3557_vm10 = vmpackc.low %vm451_vm7, %vm439_vm6  ;;  %vm464_vm6 = vcmp.eq.s32.totalorder %v4447_v36, %v4467_v40 }
  0xfd   : > { %3554 = vmatmul.msk.bf16.gmra.mxu2 %vm3553_vm1, %v4072_v55  ;;  %vm406_vm1 = vcmp.eq.s32.totalorder %v4304_v7, %v4513_v49 }
  0xfe   : > { %3578 = vmatmul.msk.bf16.gmra.mxu3 %vm3577_vm3, %v4072_v55  ;;  %vm3601_vm3 = vmpackc.low %vm405_vm0, %vm393_vm2  ;;  %vm430_vm0 = vcmp.eq.s32.totalorder %v4345_v14, %v4513_v49  ;;  %vm475_vm2 = vcmp.eq.s32.totalorder %v4430_v31, %v4464_v39 }
  0xff   : > { %vm3625_vm5 = vmpackc.low %vm406_vm1, %vm394_vm4  ;;  %vm463_vm4 = vcmp.eq.s32.totalorder %v4447_v36, %v4464_v39 }
 0x105   : > { %3600 = vmatmul.msk.bf16.vlgmr.msrb.gmra.mxu0 %vm3599_vm8, %v4072_v55  ;;  %vm440_vm8 = vcmp.eq.s32.totalorder %v4378_v20, %v4467_v40 }
 0x106   : > { %3624 = vmatmul.msk.bf16.vlgmr.msrb.gmra.mxu1 %vm3623_vm9, %v4072_v55  ;;  %vm452_vm9 = vcmp.eq.s32.totalorder %v4376_v19, %v4467_v40 }
 0x107   : > { %vm3581_vm11 = vmpackc.low %vm452_vm9, %vm440_vm8  ;;  %vm441_vm8 = vcmp.eq.s32.totalorder %v4378_v20, %v4510_v45  ;;  %vm453_vm9 = vcmp.eq.s32.totalorder %v4376_v19, %v4510_v45 }
 0x10d   : > { %3556 = vmatmul.msk.bf16.gmra.mxu2 %vm3555_vm13, %v4072_v55  ;;  %vm418_vm13 = vcmp.eq.s32.totalorder %v4334_v11, %v4513_v49 }
 0x10e   : > { %3580 = vmatmul.msk.bf16.gmra.mxu3 %vm3579_vm15, %v4072_v55  ;;  %vm3603_vm15 = vmpackc.low %vm429_vm14, %vm417_vm12  ;;  %vm487_vm14 = vcmp.eq.s32.totalorder %v4478_v41, %v4464_v39 }
 0x10f   : > { %vm3627_vm1 = vmpackc.low %vm430_vm0, %vm418_vm13  ;;  %vm499_vm0 = vcmp.eq.s32.totalorder %v4481_v42, %v4464_v39 }
 0x110   : > { %v1892_v50 = vpop.f32.mrf.mxu2  ;;  %vm3605_vm12 = vmpackc.low %vm453_vm9, %vm441_vm8  ;;  %vm466_vm8 = vcmp.eq.s32.totalorder %v4447_v36, %v4513_v49 }
 0x111   : > { %v1961_v51 = vpop.f32.mrf.mxu3 }
 0x112   : > { %v4537_v56 = vadd.f32 %v1961_v51, %v1892_v50 }
 0x115   : > { %3602 = vmatmul.msk.bf16.gmra.mxu0 %vm3601_vm3, %v4072_v55  ;;  %vm476_vm3 = vcmp.eq.s32.totalorder %v4430_v31, %v4467_v40 }
 0x116   : > { %3626 = vmatmul.msk.bf16.gmra.mxu1 %vm3625_vm5, %v4072_v55  ;;  %vm3559_vm5 = vmpackc.low %vm475_vm2, %vm463_vm4  ;;  %vm500_vm2 = vcmp.eq.s32.totalorder %v4481_v42, %v4467_v40  ;;  %vm477_vm4 = vcmp.eq.s32.totalorder %v4430_v31, %v4510_v45 }
 0x117   : > { %vm3583_vm7 = vmpackc.low %vm476_vm3, %vm464_vm6  ;;  %vm465_vm6 = vcmp.eq.s32.totalorder %v4447_v36, %v4510_v45 }
 0x118   : > { %v1894_v1 = vpop.f32.mrf.mxu2 }
 0x119   : > { %v1963_v4 = vpop.f32.mrf.mxu3 }
 0x11a   : > { %v4557_v5 = vadd.f32 %v1963_v4, %v1894_v1 }
 0x11d   : > { %3558 = vmatmul.msk.bf16.gmra.mxu2 %vm3557_vm10, %v4072_v55  ;;  %vm442_vm10 = vcmp.eq.s32.totalorder %v4378_v20, %v4513_v49 }
 0x11e   : > { %3582 = vmatmul.msk.bf16.gmra.mxu3 %vm3581_vm11, %v4072_v55  ;;  %vm454_vm11 = vcmp.eq.s32.totalorder %v4376_v19, %v4513_v49 }
 0x11f   : > { %vm3629_vm13 = vmpackc.low %vm454_vm11, %vm442_vm10  ;;  %vm523_vm10 = vcmp.eq.s32.totalorder %v4227_v54, %v4464_v39  ;;  %vm524_vm11 = vcmp.eq.s32.totalorder %v4227_v54, %v4467_v40 }
 0x120   : > { %v1897_v9 = vpop.f32.mrf.mxu2 }
 0x121   : > { %v1966_v10 = vpop.f32.mrf.mxu3 }
 0x122   : > { %v4567_v12 = vadd.f32 %v1966_v10, %v1897_v9  ;;  %v1862_v13 = vpop.f32.mrf.mxu0  ;;  %v3903_v9 = vld [vmem:[%s5664_s1 + $0x190] sm:$0xff] }
 0x123   : > { %v1931_v15 = vpop.f32.mrf.mxu1  ;;  %v3911_v10 = vld [vmem:[%s5664_s1 + $0x1d0] sm:$0xff]  ;;  %2272 = vmatpush.bf16.msra.mxu2 %v3903_v9  ;;  %v3924_v9 = vld [vmem:[%s5664_s1 + $0x238] sm:$0xff] }
 0x124   : > { %v4573_v16 = vadd.f32 %v1931_v15, %v1862_v13  ;;  %2341 = vmatpush.bf16.msra.mxu3 %v3911_v10  ;;  %2405 = vmatpush.bf16.msra.mxu0 %v3924_v9 }
 0x125   : > { %3604 = vmatmul.msk.bf16.gmra.mxu0 %vm3603_vm15, %v4072_v55  ;;  %vm488_vm15 = vcmp.eq.s32.totalorder %v4478_v41, %v4467_v40 }
 0x126   : > { %3628 = vmatmul.msk.bf16.gmra.mxu1 %vm3627_vm1, %v4072_v55  ;;  %vm3561_vm1 = vmpackc.low %vm499_vm0, %vm487_vm14  ;;  %vm512_vm14 = vcmp.eq.s32.totalorder %v4210_v47, %v4467_v40  ;;  %vm489_vm0 = vcmp.eq.s32.totalorder %v4478_v41, %v4510_v45 }
 0x127   : > { %vm3585_vm3 = vmpackc.low %vm500_vm2, %vm488_vm15  ;;  %vm501_vm2 = vcmp.eq.s32.totalorder %v4481_v42, %v4510_v45 }
 0x128   : > { %v1899_v17 = vpop.f32.mrf.mxu2  ;;  %vm3587_vm15 = vmpackc.low %vm524_vm11, %vm512_vm14  ;;  %vm513_vm14 = vcmp.eq.s32.totalorder %v4210_v47, %v4510_v45 }
 0x129   : > { %v1968_v18 = vpop.f32.mrf.mxu3 }
 0x12a   : > { %v4581_v21 = vadd.f32 %v1968_v18, %v1899_v17  ;;  %v1864_v22 = vpop.f32.mrf.mxu0 }
 0x12b   : > { %v1933_v23 = vpop.f32.mrf.mxu1 }
 0x12c   : > { %v4587_v24 = vadd.f32 %v1933_v23, %v1864_v22 }
 0x12d   : > { %3560 = vmatmul.msk.bf16.gmra.mxu2 %vm3559_vm5, %v4072_v55  ;;  %vm478_vm5 = vcmp.eq.s32.totalorder %v4430_v31, %v4513_v49 }
 0x12e   : > { %3584 = vmatmul.msk.bf16.gmra.mxu3 %vm3583_vm7, %v4072_v55  ;;  %vm3607_vm7 = vmpackc.low %vm477_vm4, %vm465_vm6  ;;  %vm502_vm4 = vcmp.eq.s32.totalorder %v4481_v42, %v4513_v49  ;;  %vm535_vm6 = vcmp.eq.s32.totalorder %v4208_v46, %v4464_v39 }
 0x12f   : > { %vm3631_vm9 = vmpackc.low %vm478_vm5, %vm466_vm8  ;;  %vm536_vm8 = vcmp.eq.s32.totalorder %v4208_v46, %v4467_v40 }
 0x130   : > { %v1902_v27 = vpop.f32.mrf.mxu2 }
 0x131   : > { %v1971_v28 = vpop.f32.mrf.mxu3 }
 0x132   : > { %v4603_v29 = vadd.f32 %v1971_v28, %v1902_v27  ;;  %v1867_v30 = vpop.f32.mrf.mxu0 }
 0x133   : > { %v1936_v32 = vpop.f32.mrf.mxu1 }
 0x134   : > { %v4609_v33 = vadd.f32 %v1936_v32, %v1867_v30 }
 0x135   : > { %3606 = vmatmul.msk.bf16.gmra.mxu0 %vm3605_vm12, %v4072_v55  ;;  %vm511_vm12 = vcmp.eq.s32.totalorder %v4210_v47, %v4464_v39 }
 0x136   : > { %3630 = vmatmul.msk.bf16.gmra.mxu1 %vm3629_vm13, %v4072_v55  ;;  %vm3563_vm13 = vmpackc.low %vm523_vm10, %vm511_vm12  ;;  %vm525_vm12 = vcmp.eq.s32.totalorder %v4227_v54, %v4510_v45 }
 0x138   : > { %v1904_v34 = vpop.f32.mrf.mxu2 }
 0x139   : > { %v1973_v35 = vpop.f32.mrf.mxu3 }
 0x13a   : > { %v4615_v37 = vadd.f32 %v1973_v35, %v1904_v34  ;;  %v1869_v38 = vpop.f32.mrf.mxu0 }
 0x13b   : > { %v1938_v43 = vpop.f32.mrf.mxu1 }
 0x13c   : > { %v4621_v44 = vadd.f32 %v1938_v43, %v1869_v38 }
 0x13d   : > { %3562 = vmatmul.msk.bf16.gmra.mxu2 %vm3561_vm1, %v4072_v55  ;;  %vm490_vm1 = vcmp.eq.s32.totalorder %v4478_v41, %v4513_v49 }
 0x13e   : > { %3586 = vmatmul.msk.bf16.gmra.mxu3 %vm3585_vm3, %v4072_v55  ;;  %vm3609_vm3 = vmpackc.low %vm501_vm2, %vm489_vm0  ;;  %vm514_vm0 = vcmp.eq.s32.totalorder %v4210_v47, %v4513_v49  ;;  %vm559_vm2 = vcmp.eq.s32.totalorder %v4225_v53, %v4464_v39 }
 0x13f   : > { %vm3633_vm5 = vmpackc.low %vm502_vm4, %vm490_vm1  ;;  %vm560_vm4 = vcmp.eq.s32.totalorder %v4225_v53, %v4467_v40 }
 0x140   : > { %v1907_v50 = vpop.f32.mrf.mxu2 }
 0x141   : > { %v1976_v51 = vpop.f32.mrf.mxu3 }
 0x142   : > { %v4629_v59 = vadd.f32 %v1976_v51, %v1907_v50  ;;  %v1872_v0 = vpop.f32.mrf.mxu0 }
 0x143   : > { %v1941_v1 = vpop.f32.mrf.mxu1 }
 0x144   : > { %v4635_v4 = vadd.f32 %v1941_v1, %v1872_v0  ;;  %v3902_v0 = vld [vmem:[%s5664_s1 + $0x188] sm:$0xff] }
 0x145   : > { %3608 = vmatmul.msk.bf16.gmra.mxu0 %vm3607_vm7, %v4072_v55  ;;  %vm547_vm7 = vcmp.eq.s32.totalorder %v4223_v52, %v4464_v39  ;;  %v3910_v1 = vld [vmem:[%s5664_s1 + $0x1c8] sm:$0xff]  ;;  %2273 = vmatpush.bf16.msra.mxu2 %v3902_v0 }
 0x146   : > { %3632 = vmatmul.msk.bf16.gmra.mxu1 %vm3631_vm9, %v4072_v55  ;;  %vm548_vm9 = vcmp.eq.s32.totalorder %v4223_v52, %v4467_v40  ;;  %vm3565_vm10 = vmpackc.low %vm547_vm7, %vm535_vm6  ;;  %2342 = vmatpush.bf16.msra.mxu3 %v3910_v1 }
 0x147   : > { %vm3589_vm11 = vmpackc.low %vm548_vm9, %vm536_vm8  ;;  %vm537_vm8 = vcmp.eq.s32.totalorder %v4208_v46, %v4510_v45  ;;  %vm549_vm9 = vcmp.eq.s32.totalorder %v4223_v52, %v4510_v45 }
 0x148   : > { %v1909_v13 = vpop.f32.mrf.mxu2 }
 0x149   : > { %v1978_v15 = vpop.f32.mrf.mxu3 }
 0x14a   : > { %v4649_v17 = vadd.f32 %v1978_v15, %v1909_v13  ;;  %v1874_v18 = vpop.f32.mrf.mxu0 }
 0x14b   : > { %v1943_v22 = vpop.f32.mrf.mxu1 }
 0x14c   : > { %v4655_v23 = vadd.f32 %v1943_v22, %v1874_v18 }
 0x14d   : > { %3564 = vmatmul.msk.bf16.gmra.mxu2 %vm3563_vm13, %v4072_v55  ;;  %vm526_vm13 = vcmp.eq.s32.totalorder %v4227_v54, %v4513_v49 }
 0x14e   : > { %3588 = vmatmul.msk.bf16.gmra.mxu3 %vm3587_vm15, %v4072_v55  ;;  %vm3611_vm15 = vmpackc.low %vm525_vm12, %vm513_vm14  ;;  %vm583_vm14 = vcmp.eq.s32.totalorder %v4244_v58, %v4464_v39 }
 0x14f   : > { %vm3635_vm1 = vmpackc.low %vm526_vm13, %vm514_vm0  ;;  %vm584_vm0 = vcmp.eq.s32.totalorder %v4244_v58, %v4467_v40 }
 0x150   : > { %v1912_v25 = vpop.f32.mrf.mxu2  ;;  %vm3613_vm12 = vmpackc.low %vm549_vm9, %vm537_vm8 }
 0x151   : > { %v1981_v26 = vpop.f32.mrf.mxu3 }
 0x152   : > { %v4663_v27 = vadd.f32 %v1981_v26, %v1912_v25  ;;  %v1877_v28 = vpop.f32.mrf.mxu0 }
 0x153   : > { %v1946_v30 = vpop.f32.mrf.mxu1 }
 0x154   : > { %v4669_v32 = vadd.f32 %v1946_v30, %v1877_v28 }
 0x155   : > { %3610 = vmatmul.msk.bf16.gmra.mxu0 %vm3609_vm3, %v4072_v55  ;;  %vm571_vm3 = vcmp.eq.s32.totalorder %v4249_v60, %v4464_v39 }
 0x156   : > { %3634 = vmatmul.msk.bf16.gmra.mxu1 %vm3633_vm5, %v4072_v55  ;;  %vm572_vm5 = vcmp.eq.s32.totalorder %v4249_v60, %v4467_v40  ;;  %vm3567_vm6 = vmpackc.low %vm571_vm3, %vm559_vm2 }
 0x157   : > { %vm3591_vm7 = vmpackc.low %vm572_vm5, %vm560_vm4  ;;  %vm561_vm4 = vcmp.eq.s32.totalorder %v4225_v53, %v4510_v45  ;;  %vm573_vm5 = vcmp.eq.s32.totalorder %v4249_v60, %v4510_v45 }
 0x158   : > { %v1914_v34 = vpop.f32.mrf.mxu2  ;;  %vm3615_vm8 = vmpackc.low %vm573_vm5, %vm561_vm4 }
 0x159   : > { %v1983_v35 = vpop.f32.mrf.mxu3 }
 0x15a   : > { %v4679_v38 = vadd.f32 %v1983_v35, %v1914_v34  ;;  %v1879_v43 = vpop.f32.mrf.mxu0 }
 0x15b   : > { %v1948_v50 = vpop.f32.mrf.mxu1 }
 0x15c   : > { %v4685_v51 = vadd.f32 %v1948_v50, %v1879_v43 }
 0x15d   : > { %3566 = vmatmul.msk.bf16.gmra.mxu2 %vm3565_vm10, %v4072_v55  ;;  %vm538_vm10 = vcmp.eq.s32.totalorder %v4208_v46, %v4513_v49 }
 0x15e   : > { %3590 = vmatmul.msk.bf16.gmra.mxu3 %vm3589_vm11, %v4072_v55  ;;  %vm550_vm11 = vcmp.eq.s32.totalorder %v4223_v52, %v4513_v49 }
 0x15f   : > { %vm3637_vm13 = vmpackc.low %vm550_vm11, %vm538_vm10  ;;  %vm607_vm10 = vcmp.eq.s32.totalorder %v4264_v63, %v4464_v39  ;;  %vm619_vm11 = vcmp.eq.s32.totalorder %v4257_v62, %v4464_v39 }
 0x160   : > { %v1917_v10 = vpop.f32.mrf.mxu2 }
 0x161   : > { %v1986_v13 = vpop.f32.mrf.mxu3 }
 0x162   : > { %v4700_v15 = vadd.f32 %v1986_v13, %v1917_v10  ;;  %v1882_v18 = vpop.f32.mrf.mxu0 }
 0x163   : > { %v1951_v22 = vpop.f32.mrf.mxu1 }
 0x164   : > { %v4706_v25 = vadd.f32 %v1951_v22, %v1882_v18  ;;  %v3909_v22 = vld [vmem:[%s5664_s1 + $0x1c0] sm:$0xff] }
 0x165   : > { %3612 = vmatmul.msk.bf16.gmra.mxu0 %vm3611_vm15, %v4072_v55  ;;  %2343 = vmatpush.bf16.msra.mxu3 %v3909_v22  ;;  %vm595_vm15 = vcmp.eq.s32.totalorder %v4242_v57, %v4464_v39 }
 0x166   : > { %3636 = vmatmul.msk.bf16.gmra.mxu1 %vm3635_vm1, %v4072_v55  ;;  %vm596_vm1 = vcmp.eq.s32.totalorder %v4242_v57, %v4467_v40  ;;  %vm3569_vm2 = vmpackc.low %vm595_vm15, %vm583_vm14 }
 0x167   : > { %vm3593_vm3 = vmpackc.low %vm596_vm1, %vm584_vm0  ;;  %vm585_vm0 = vcmp.eq.s32.totalorder %v4244_v58, %v4510_v45  ;;  %vm597_vm1 = vcmp.eq.s32.totalorder %v4242_v57, %v4510_v45 }
 0x168   : > { %v1919_v26 = vpop.f32.mrf.mxu2  ;;  %vm3571_vm14 = vmpackc.low %vm619_vm11, %vm607_vm10 }
 0x169   : > { %v1988_v28 = vpop.f32.mrf.mxu3  ;;  %vm3617_vm4 = vmpackc.low %vm597_vm1, %vm585_vm0 }
 0x16a   : > { %v4716_v30 = vadd.f32 %v1988_v28, %v1919_v26  ;;  %v1884_v34 = vpop.f32.mrf.mxu0  ;;  %v3923_v26 = vld [vmem:[%s5664_s1 + $0x230] sm:$0xff] }
 0x16b   : > { %v1953_v35 = vpop.f32.mrf.mxu1  ;;  %2406 = vmatpush.bf16.msra.mxu0 %v3923_v26 }
 0x16c   : > { %v4722_v43 = vadd.f32 %v1953_v35, %v1884_v34 }
 0x16d   : > { %3568 = vmatmul.msk.bf16.gmra.mxu2 %vm3567_vm6, %v4072_v55  ;;  %vm562_vm6 = vcmp.eq.s32.totalorder %v4225_v53, %v4513_v49 }
 0x16e   : > { %3592 = vmatmul.msk.bf16.gmra.mxu3 %vm3591_vm7, %v4072_v55  ;;  %vm574_vm7 = vcmp.eq.s32.totalorder %v4249_v60, %v4513_v49 }
 0x16f   : > { %vm3639_vm9 = vmpackc.low %vm574_vm7, %vm562_vm6  ;;  %vm631_vm6 = vcmp.eq.s32.totalorder %v4251_v61, %v4464_v39  ;;  %vm643_vm7 = vcmp.eq.s32.totalorder %v4293_v6, %v4464_v39  ;;  %v3919_v39 = vld [vmem:[%s5664_s1 + $0x210] sm:$0xff] }
 0x170   : > { %v2000_v50 = vpop.f32.mrf.mxu2  ;;  %vm3573_vm10 = vmpackc.low %vm643_vm7, %vm631_vm6 }
 0x171   : > { %v2001_v0 = vadd.f32 %v2000_v50, %v4573_v16  ;;  %v2069_v1 = vpop.f32.mrf.mxu3  ;;  %v3901_v16 = vld [vmem:[%s5664_s1 + $0x180] sm:$0xff] }
 0x172   : > { %v1887_v9 = vpop.f32.mrf.mxu0  ;;  %2274 = vmatpush.bf16.msra.mxu2 %v3901_v16 }
 0x173   : > { %v2070_v10 = vadd.f32 %v2069_v1, %v2001_v0  ;;  %v1956_v13 = vpop.f32.mrf.mxu1 }
 0x174   : > { %v4735_v18 = vadd.f32 %v1956_v13, %v1887_v9 }
 0x175   : > { %3614 = vmatmul.msk.bf16.gmra.mxu0 %vm3613_vm12, %v4072_v55  ;;  %vm608_vm12 = vcmp.eq.s32.totalorder %v4264_v63, %v4467_v40 }
 0x176   : > { %3638 = vmatmul.msk.bf16.gmra.mxu1 %vm3637_vm13, %v4072_v55  ;;  %vm620_vm13 = vcmp.eq.s32.totalorder %v4257_v62, %v4467_v40 }
 0x177   : > { %vm3595_vm15 = vmpackc.low %vm620_vm13, %vm608_vm12  ;;  %vm609_vm12 = vcmp.eq.s32.totalorder %v4264_v63, %v4510_v45  ;;  %vm621_vm13 = vcmp.eq.s32.totalorder %v4257_v62, %v4510_v45 }
 0x178   : > { %v2002_v28 = vpop.f32.mrf.mxu2  ;;  %vm3619_vm0 = vmpackc.low %vm621_vm13, %vm609_vm12 }
 0x179   : > { %v2003_v34 = vadd.f32 %v2002_v28, %v4587_v24  ;;  %v2071_v35 = vpop.f32.mrf.mxu3 }
 0x17a   : > { %v1889_v50 = vpop.f32.mrf.mxu0 }
 0x17b   : > { %v2072_v0 = vadd.f32 %v2071_v35, %v2003_v34  ;;  %v1958_v1 = vpop.f32.mrf.mxu1 }
 0x17c   : > { %v4757_v9 = vadd.f32 %v1958_v1, %v1889_v50 }
 0x17d   : > { %3570 = vmatmul.msk.bf16.gmra.mxu2 %vm3569_vm2, %v4072_v55  ;;  %vm586_vm2 = vcmp.eq.s32.totalorder %v4244_v58, %v4513_v49 }
 0x17e   : > { %3594 = vmatmul.msk.bf16.gmra.mxu3 %vm3593_vm3, %v4072_v55  ;;  %vm598_vm3 = vcmp.eq.s32.totalorder %v4242_v57, %v4513_v49 }
 0x17f   : > { %vm3641_vm5 = vmpackc.low %vm598_vm3, %vm586_vm2 }
 0x180   : > { %v2005_v24 = vpop.f32.mrf.mxu2 }
 0x181   : > { %v2006_v13 = vadd.f32 %v2005_v24, %v4609_v33  ;;  %v2074_v16 = vpop.f32.mrf.mxu3  ;;  %v3932_v33 = vld [vmem:[%s5664_s1 + $0x278] sm:$0xff] }
 0x182   : > { %v2138_v22 = vpop.f32.mrf.mxu0  ;;  %2474 = vmatpush.bf16.msra.mxu1 %v3932_v33  ;;  %v3930_v33 = vld [vmem:[%s5664_s1 + $0x268] sm:$0xff] }
 0x183   : > { %v2075_v26 = vadd.f32 %v2074_v16, %v2006_v13  ;;  %v2139_v28 = vadd.f32 %v2138_v22, %v2070_v10  ;;  %v2207_v34 = vpop.f32.mrf.mxu1 }
 0x185   : > { %v4770_v35 = vadd.f32 %v2207_v34, %v2139_v28  ;;  %3616 = vmatmul.msk.bf16.gmra.mxu0 %vm3615_vm8, %v4072_v55  ;;  %v3940_v34 = vld [vmem:[%s5664_s1 + $0x2b8] sm:$0xff]  ;;  %vm632_vm8 = vcmp.eq.s32.totalorder %v4251_v61, %v4467_v40 }
 0x186   : > { %3640 = vmatmul.msk.bf16.gmra.mxu1 %vm3639_vm9, %v4072_v55  ;;  %2543 = vmatpush.bf16.msrb.mxu2 %v3940_v34  ;;  %vm644_vm9 = vcmp.eq.s32.totalorder %v4293_v6, %v4467_v40  ;;  %v3918_v40 = vld [vmem:[%s5664_s1 + $0x208] sm:$0xff] }
 0x187   : > { %vm3597_vm11 = vmpackc.low %vm644_vm9, %vm632_vm8  ;;  %vm633_vm8 = vcmp.eq.s32.totalorder %v4251_v61, %v4510_v45  ;;  %vm645_vm9 = vcmp.eq.s32.totalorder %v4293_v6, %v4510_v45 }
 0x188   : > { %v2007_v50 = vpop.f32.mrf.mxu2  ;;  %vm3621_vm12 = vmpackc.low %vm645_vm9, %vm633_vm8 }
 0x189   : > { %v2008_v1 = vadd.f32 %v2007_v50, %v4621_v44  ;;  %v2076_v24 = vpop.f32.mrf.mxu3  ;;  %v3931_v44 = vld [vmem:[%s5664_s1 + $0x270] sm:$0xff]  ;;  %v3948_v50 = vld [vmem:[%s5664_s1 + $0x2f8] sm:$0xff] }
 0x18a   : > { %v2140_v10 = vpop.f32.mrf.mxu0  ;;  %2475 = vmatpush.bf16.msra.mxu1 %v3931_v44  ;;  %2612 = vmatpush.bf16.msrb.mxu3 %v3948_v50  ;;  %v3929_v50 = vld [vmem:[%s5664_s1 + $0x260] sm:$0xff] }
 0x18b   : > { %v2077_v13 = vadd.f32 %v2076_v24, %v2008_v1  ;;  %v2141_v16 = vadd.f32 %v2140_v10, %v2072_v0  ;;  %v2209_v22 = vpop.f32.mrf.mxu1  ;;  %v3922_v0 = vld [vmem:[%s5664_s1 + $0x228] sm:$0xff] }
 0x18c   : > { %2407 = vmatpush.bf16.msra.mxu0 %v3922_v0  ;;  %v3921_v0 = vld [vmem:[%s5664_s1 + $0x220] sm:$0xff] }
 0x18d   : > { %v4786_v28 = vadd.f32 %v2209_v22, %v2141_v16  ;;  %3572 = vmatmul.msk.bf16.gmra.mxu2 %vm3571_vm14, %v4072_v55  ;;  %vm610_vm14 = vcmp.eq.s32.totalorder %v4264_v63, %v4513_v49 }
 0x18e   : > { %3596 = vmatmul.msk.bf16.gmra.mxu3 %vm3595_vm15, %v4072_v55  ;;  %2476 = vmatpush.bf16.msra.mxu1 %v3930_v33  ;;  %v3928_v33 = vld [vmem:[%s5664_s1 + $0x258] sm:$0xff]  ;;  %vm622_vm15 = vcmp.eq.s32.totalorder %v4257_v62, %v4513_v49 }
 0x18f   : > { %vm3643_vm1 = vmpackc.low %vm622_vm15, %vm610_vm14 }
 0x190   : > { %v2010_v1 = vpop.f32.mrf.mxu2  ;;  %2408 = vmatpush.bf16.msra.mxu0 %v3921_v0 }
 0x191   : > { %v2011_v24 = vadd.f32 %v2010_v1, %v4635_v4  ;;  %v2079_v10 = vpop.f32.mrf.mxu3 }
 0x192   : > { %v2143_v16 = vpop.f32.mrf.mxu0  ;;  %2477 = vmatpush.bf16.msra.mxu1 %v3929_v50  ;;  %v3927_v50 = vld [vmem:[%s5664_s1 + $0x250] sm:$0xff] }
 0x193   : > { %v2080_v22 = vadd.f32 %v2079_v10, %v2011_v24  ;;  %v2144_v44 = vadd.f32 %v2143_v16, %v2075_v26  ;;  %v2212_v34 = vpop.f32.mrf.mxu1  ;;  %v3920_v26 = vld [vmem:[%s5664_s1 + $0x218] sm:$0xff] }
 0x194   : > { %2409 = vmatpush.bf16.msra.mxu0 %v3920_v26 }
 0x195   : > { %v4814_v4 = vadd.f32 %v2212_v34, %v2144_v44  ;;  %3618 = vmatmul.msk.bf16.gmra.mxu0 %vm3617_vm4, %v4072_v55 }
 0x196   : > { %3642 = vmatmul.msk.bf16.gmra.mxu1 %vm3641_vm5, %v4072_v55 }
 0x197   : > { %2478 = vmatpush.bf16.msra.mxu1 %v3928_v33 }
 0x198   : > { %v2012_v1 = vpop.f32.mrf.mxu2  ;;  %2410 = vmatpush.bf16.msra.mxu0 %v3919_v39  ;;  %v3925_v39 = vld [vmem:[%s5664_s1 + $0x240] sm:$0xff] }
 0x199   : > { %v2013_v24 = vadd.f32 %v2012_v1, %v4655_v23  ;;  %v2081_v10 = vpop.f32.mrf.mxu3 }
 0x19a   : > { %v2145_v16 = vpop.f32.mrf.mxu0 }
 0x19b   : > { %v2082_v44 = vadd.f32 %v2081_v10, %v2013_v24  ;;  %v2146_v34 = vadd.f32 %v2145_v16, %v2077_v13  ;;  %v2214_v0 = vpop.f32.mrf.mxu1  ;;  %2479 = vmatpush.bf16.msra.mxu1 %v3927_v50  ;;  %v3926_v13 = vld [vmem:[%s5664_s1 + $0x248] sm:$0xff]  ;;  %v3947_v50 = vld [vmem:[%s5664_s1 + $0x2f0] sm:$0xff] }
 0x19c   : > { %2411 = vmatpush.bf16.msra.mxu0 %v3918_v40  ;;  %v4881_v40 = vadd.s32 768, %v4212_v48  ;;  %2613 = vmatpush.bf16.msrb.mxu3 %v3947_v50 }
 0x19d   : > { %v4839_v23 = vadd.f32 %v2214_v0, %v2146_v34  ;;  %3574 = vmatmul.msk.bf16.gmra.mxu2 %vm3573_vm10, %v4072_v55  ;;  %v3917_v0 = vld [vmem:[%s5664_s1 + $0x200] sm:$0xff]  ;;  %vm634_vm10 = vcmp.eq.s32.totalorder %v4251_v61, %v4513_v49 }
 0x19e   : > { %3598 = vmatmul.msk.bf16.gmra.mxu3 %vm3597_vm11, %v4072_v55  ;;  %vm371_vm2 = vcmp.eq.s32.totalorder %v4275_v3, %v4881_v40  ;;  %vm383_vm3 = vcmp.eq.s32.totalorder %v4273_v2, %v4881_v40  ;;  %vm646_vm11 = vcmp.eq.s32.totalorder %v4293_v6, %v4513_v49  ;;  %vm407_vm14 = vcmp.eq.s32.totalorder %v4304_v7, %v4881_v40 }
 0x19f   : > { %2480 = vmatpush.bf16.msra.mxu1 %v3926_v13  ;;  %vm3647_vm6 = vmpackc.low %vm383_vm3, %vm371_vm2 }
 0x1a0   : > { %v2015_v26 = vpop.f32.mrf.mxu2  ;;  %2412 = vmatpush.bf16.msra.mxu0 %v3917_v0  ;;  %vm3645_vm13 = vmpackc.low %vm646_vm11, %vm634_vm10  ;;  %vm419_vm10 = vcmp.eq.s32.totalorder %v4334_v11, %v4881_v40 }
 0x1a1   : > { %v2016_v33 = vadd.f32 %v2015_v26, %v4669_v32  ;;  %v2084_v1 = vpop.f32.mrf.mxu3  ;;  %v4884_v26 = vadd.s32 896, %v4212_v48 }
 0x1a2   : > { %v2148_v24 = vpop.f32.mrf.mxu0 }
 0x1a3   : > { %v2085_v10 = vadd.f32 %v2084_v1, %v2016_v33  ;;  %v2149_v16 = vadd.f32 %v2148_v24, %v2080_v22  ;;  %v2217_v34 = vpop.f32.mrf.mxu1  ;;  %v3939_v22 = vld [vmem:[%s5664_s1 + $0x2b0] sm:$0xff]  ;;  %2481 = vmatpush.bf16.msra.mxu1 %v3925_v39  ;;  %vm372_vm4 = vcmp.eq.s32.totalorder %v4275_v3, %v4884_v26  ;;  %vm384_vm5 = vcmp.eq.s32.totalorder %v4273_v2, %v4884_v26 }
 0x1a4   : > { %2544 = vmatpush.bf16.msrb.mxu2 %v3939_v22  ;;  %vm3671_vm7 = vmpackc.low %vm384_vm5, %vm372_vm4  ;;  %vm408_vm15 = vcmp.eq.s32.totalorder %v4304_v7, %v4884_v26  ;;  %vm396_vm2 = vcmp.eq.s32.totalorder %v4309_v8, %v4884_v26  ;;  %vm420_vm11 = vcmp.eq.s32.totalorder %v4334_v11, %v4884_v26 }
 0x1a5   : > { %v4864_v32 = vadd.f32 %v2217_v34, %v2149_v16  ;;  %3620 = vmatmul.msk.bf16.gmra.mxu0 %vm3619_vm0, %v4072_v55  ;;  %vm395_vm0 = vcmp.eq.s32.totalorder %v4309_v8, %v4881_v40  ;;  %vm3673_vm3 = vmpackc.low %vm408_vm15, %vm396_vm2 }
 0x1a6   : > { %3644 = vmatmul.msk.bf16.gmra.mxu1 %vm3643_vm1, %v4072_v55  ;;  %vm3649_vm1 = vmpackc.low %vm407_vm14, %vm395_vm0  ;;  %vm432_vm14 = vcmp.eq.s32.totalorder %v4345_v14, %v4884_v26 }
 0x1a7   : > { %vm3675_vm15 = vmpackc.low %vm432_vm14, %vm420_vm11 }
 0x1a8   : > { %v2017_v13 = vpop.f32.mrf.mxu2 }
 0x1a9   : > { %v2018_v33 = vadd.f32 %v2017_v13, %v4685_v51  ;;  %v2086_v1 = vpop.f32.mrf.mxu3 }
 0x1aa   : > { %v2150_v24 = vpop.f32.mrf.mxu0 }
 0x1ab   : > { %v2087_v16 = vadd.f32 %v2086_v1, %v2018_v33  ;;  %v2151_v34 = vadd.f32 %v2150_v24, %v2082_v44  ;;  %v2219_v0 = vpop.f32.mrf.mxu1 }
 0x1ad   : > { %v4895_v39 = vadd.f32 %v2219_v0, %v2151_v34  ;;  %3648 = vmatmul.msk.bf16.vlgmr.msra.gmra.mxu2 %vm3647_vm6, %v4072_v55 }
 0x1ae   : > { %3672 = vmatmul.msk.bf16.vlgmr.msra.gmra.mxu3 %vm3671_vm7, %v4072_v55 }
 0x1b0   : > { %v2020_v51 = vpop.f32.mrf.mxu2 }
 0x1b1   : > { %v2021_v22 = vadd.f32 %v2020_v51, %v4706_v25  ;;  %v2089_v50 = vpop.f32.mrf.mxu3 }
 0x1b2   : > { %v2153_v44 = vpop.f32.mrf.mxu0 }
 0x1b3   : > { %v2090_v13 = vadd.f32 %v2089_v50, %v2021_v22  ;;  %v2154_v33 = vadd.f32 %v2153_v44, %v2085_v10  ;;  %v2222_v1 = vpop.f32.mrf.mxu1  ;;  %v4932_v50 = vadd.s32 1024, %v4212_v48 }
 0x1b5   : > { %v4908_v24 = vadd.f32 %v2222_v1, %v2154_v33  ;;  %3622 = vmatmul.msk.bf16.gmra.mxu0 %vm3621_vm12, %v4072_v55  ;;  %v4935_v33 = vadd.s32 1152, %v4212_v48  ;;  %vm373_vm4 = vcmp.eq.s32.totalorder %v4275_v3, %v4932_v50  ;;  %vm385_vm5 = vcmp.eq.s32.totalorder %v4273_v2, %v4932_v50 }
 0x1b6   : > { %3646 = vmatmul.msk.bf16.gmra.mxu1 %vm3645_vm13, %v4072_v55  ;;  %vm3695_vm8 = vmpackc.low %vm385_vm5, %vm373_vm4  ;;  %vm431_vm12 = vcmp.eq.s32.totalorder %v4345_v14, %v4881_v40  ;;  %vm409_vm0 = vcmp.eq.s32.totalorder %v4304_v7, %v4932_v50  ;;  %vm397_vm2 = vcmp.eq.s32.totalorder %v4309_v8, %v4932_v50  ;;  %vm433_vm14 = vcmp.eq.s32.totalorder %v4345_v14, %v4932_v50 }
 0x1b7   : > { %vm374_vm6 = vcmp.eq.s32.totalorder %v4275_v3, %v4935_v33  ;;  %vm386_vm7 = vcmp.eq.s32.totalorder %v4273_v2, %v4935_v33  ;;  %vm3651_vm13 = vmpackc.low %vm431_vm12, %vm419_vm10  ;;  %vm398_vm4 = vcmp.eq.s32.totalorder %v4309_v8, %v4935_v33  ;;  %vm421_vm12 = vcmp.eq.s32.totalorder %v4334_v11, %v4932_v50 }
 0x1b8   : > { %v2022_v25 = vpop.f32.mrf.mxu2  ;;  %vm3719_vm9 = vmpackc.low %vm386_vm7, %vm374_vm6  ;;  %vm443_vm6 = vcmp.eq.s32.totalorder %v4378_v20, %v4881_v40  ;;  %vm455_vm7 = vcmp.eq.s32.totalorder %v4376_v19, %v4881_v40 }
 0x1b9   : > { %v2023_v45 = vadd.f32 %v2022_v25, %v4722_v43  ;;  %v2091_v34 = vpop.f32.mrf.mxu3  ;;  %v3938_v43 = vld [vmem:[%s5664_s1 + $0x2a8] sm:$0xff]  ;;  %vm3653_vm10 = vmpackc.low %vm455_vm7, %vm443_vm6  ;;  %vm468_vm6 = vcmp.eq.s32.totalorder %v4447_v36, %v4884_v26 }
 0x1ba   : > { %v2155_v0 = vpop.f32.mrf.mxu0  ;;  %2545 = vmatpush.bf16.msrb.mxu2 %v3938_v43 }
 0x1bb   : > { %v2092_v49 = vadd.f32 %v2091_v34, %v2023_v45  ;;  %v2156_v10 = vadd.f32 %v2155_v0, %v2087_v16  ;;  %v2224_v51 = vpop.f32.mrf.mxu1  ;;  %v3946_v16 = vld [vmem:[%s5664_s1 + $0x2e8] sm:$0xff] }
 0x1bc   : > { %2614 = vmatpush.bf16.msrb.mxu3 %v3946_v16 }
 0x1bd   : > { %v4921_v22 = vadd.f32 %v2224_v51, %v2156_v10  ;;  %3650 = vmatmul.msk.bf16.gmra.mxu2 %vm3649_vm1, %v4072_v55  ;;  %vm410_vm1 = vcmp.eq.s32.totalorder %v4304_v7, %v4935_v33 }
 0x1be   : > { %3674 = vmatmul.msk.bf16.gmra.mxu3 %vm3673_vm3, %v4072_v55  ;;  %vm3697_vm3 = vmpackc.low %vm409_vm0, %vm397_vm2  ;;  %vm434_vm0 = vcmp.eq.s32.totalorder %v4345_v14, %v4935_v33  ;;  %vm479_vm2 = vcmp.eq.s32.totalorder %v4430_v31, %v4881_v40 }
 0x1bf   : > { %vm3721_vm5 = vmpackc.low %vm410_vm1, %vm398_vm4  ;;  %vm467_vm4 = vcmp.eq.s32.totalorder %v4447_v36, %v4881_v40 }
 0x1c0   : > { %v2025_v44 = vpop.f32.mrf.mxu2 }
 0x1c1   : > { %v2026_v1 = vadd.f32 %v2025_v44, %v4735_v18  ;;  %v2094_v25 = vpop.f32.mrf.mxu3 }
 0x1c2   : > { %v2158_v45 = vpop.f32.mrf.mxu0 }
 0x1c3   : > { %v2095_v34 = vadd.f32 %v2094_v25, %v2026_v1  ;;  %v2159_v0 = vadd.f32 %v2158_v45, %v2090_v13  ;;  %v2227_v10 = vpop.f32.mrf.mxu1 }
 0x1c5   : > { %v4946_v51 = vadd.f32 %v2227_v10, %v2159_v0  ;;  %3696 = vmatmul.msk.bf16.vlgmr.msra.gmra.mxu0 %vm3695_vm8, %v4072_v55  ;;  %vm444_vm8 = vcmp.eq.s32.totalorder %v4378_v20, %v4884_v26 }
 0x1c6   : > { %3720 = vmatmul.msk.bf16.vlgmr.msra.gmra.mxu1 %vm3719_vm9, %v4072_v55  ;;  %vm456_vm9 = vcmp.eq.s32.totalorder %v4376_v19, %v4884_v26 }
 0x1c7   : > { %vm3677_vm11 = vmpackc.low %vm456_vm9, %vm444_vm8  ;;  %vm445_vm8 = vcmp.eq.s32.totalorder %v4378_v20, %v4932_v50  ;;  %vm457_vm9 = vcmp.eq.s32.totalorder %v4376_v19, %v4932_v50 }
 0x1c8   : > { %v2027_v18 = vpop.f32.mrf.mxu2 }
 0x1c9   : > { %v2028_v43 = vadd.f32 %v2027_v18, %v4757_v9  ;;  %v2096_v16 = vpop.f32.mrf.mxu3 }
 0x1ca   : > { %v2160_v44 = vpop.f32.mrf.mxu0 }
 0x1cb   : > { %v2097_v13 = vadd.f32 %v2096_v16, %v2028_v43  ;;  %v2161_v1 = vadd.f32 %v2160_v44, %v2092_v49  ;;  %v2229_v25 = vpop.f32.mrf.mxu1 }
 0x1cd   : > { %v4959_v45 = vadd.f32 %v2229_v25, %v2161_v1  ;;  %3652 = vmatmul.msk.bf16.gmra.mxu2 %vm3651_vm13, %v4072_v55  ;;  %vm422_vm13 = vcmp.eq.s32.totalorder %v4334_v11, %v4935_v33 }
 0x1ce   : > { %3676 = vmatmul.msk.bf16.gmra.mxu3 %vm3675_vm15, %v4072_v55  ;;  %vm3699_vm15 = vmpackc.low %vm433_vm14, %vm421_vm12  ;;  %vm491_vm14 = vcmp.eq.s32.totalorder %v4478_v41, %v4881_v40 }
 0x1cf   : > { %vm3723_vm1 = vmpackc.low %vm434_vm0, %vm422_vm13  ;;  %vm503_vm0 = vcmp.eq.s32.totalorder %v4481_v42, %v4881_v40 }
 0x1d0   : > { %v2030_v9 = vpop.f32.mrf.mxu2  ;;  %vm3701_vm12 = vmpackc.low %vm457_vm9, %vm445_vm8  ;;  %vm470_vm8 = vcmp.eq.s32.totalorder %v4447_v36, %v4935_v33 }
 0x1d1   : > { %v2031_v0 = vadd.f32 %v2030_v9, %v4537_v56  ;;  %v2099_v10 = vpop.f32.mrf.mxu3  ;;  %v3937_v56 = vld [vmem:[%s5664_s1 + $0x2a0] sm:$0xff] }
 0x1d2   : > { %v2163_v49 = vpop.f32.mrf.mxu0  ;;  %2546 = vmatpush.bf16.msrb.mxu2 %v3937_v56 }
 0x1d3   : > { %v2100_v18 = vadd.f32 %v2099_v10, %v2031_v0  ;;  %v2164_v43 = vadd.f32 %v2163_v49, %v2095_v34  ;;  %v2232_v16 = vpop.f32.mrf.mxu1  ;;  %v3945_v34 = vld [vmem:[%s5664_s1 + $0x2e0] sm:$0xff] }
 0x1d4   : > { %2615 = vmatpush.bf16.msrb.mxu3 %v3945_v34 }
 0x1d5   : > { %v4972_v44 = vadd.f32 %v2232_v16, %v2164_v43  ;;  %3698 = vmatmul.msk.bf16.gmra.mxu0 %vm3697_vm3, %v4072_v55  ;;  %vm480_vm3 = vcmp.eq.s32.totalorder %v4430_v31, %v4884_v26 }
 0x1d6   : > { %3722 = vmatmul.msk.bf16.gmra.mxu1 %vm3721_vm5, %v4072_v55  ;;  %vm3655_vm5 = vmpackc.low %vm479_vm2, %vm467_vm4  ;;  %vm504_vm2 = vcmp.eq.s32.totalorder %v4481_v42, %v4884_v26  ;;  %vm481_vm4 = vcmp.eq.s32.totalorder %v4430_v31, %v4932_v50 }
 0x1d7   : > { %vm3679_vm7 = vmpackc.low %vm480_vm3, %vm468_vm6  ;;  %vm469_vm6 = vcmp.eq.s32.totalorder %v4447_v36, %v4932_v50 }
 0x1d8   : > { %v2032_v1 = vpop.f32.mrf.mxu2 }
 0x1d9   : > { %v2033_v25 = vadd.f32 %v2032_v1, %v4557_v5  ;;  %v2101_v9 = vpop.f32.mrf.mxu3 }
 0x1da   : > { %v2165_v0 = vpop.f32.mrf.mxu0 }
 0x1db   : > { %v2102_v10 = vadd.f32 %v2101_v9, %v2033_v25  ;;  %v2166_v49 = vadd.f32 %v2165_v0, %v2097_v13  ;;  %v2234_v43 = vpop.f32.mrf.mxu1 }
 0x1dd   : > { %v4991_v16 = vadd.f32 %v2234_v43, %v2166_v49  ;;  %3654 = vmatmul.msk.bf16.gmra.mxu2 %vm3653_vm10, %v4072_v55  ;;  %vm446_vm10 = vcmp.eq.s32.totalorder %v4378_v20, %v4935_v33 }
 0x1de   : > { %3678 = vmatmul.msk.bf16.gmra.mxu3 %vm3677_vm11, %v4072_v55  ;;  %vm458_vm11 = vcmp.eq.s32.totalorder %v4376_v19, %v4935_v33 }
 0x1df   : > { %vm3725_vm13 = vmpackc.low %vm458_vm11, %vm446_vm10  ;;  %vm527_vm10 = vcmp.eq.s32.totalorder %v4227_v54, %v4881_v40  ;;  %vm528_vm11 = vcmp.eq.s32.totalorder %v4227_v54, %v4884_v26 }
 0x1e0   : > { %v2035_v5 = vpop.f32.mrf.mxu2 }
 0x1e1   : > { %v2036_v56 = vadd.f32 %v2035_v5, %v4567_v12  ;;  %v2104_v34 = vpop.f32.mrf.mxu3 }
 0x1e2   : > { %v2168_v1 = vpop.f32.mrf.mxu0 }
 0x1e3   : > { %v2105_v13 = vadd.f32 %v2104_v34, %v2036_v56  ;;  %v2169_v25 = vadd.f32 %v2168_v1, %v2100_v18  ;;  %v2237_v9 = vpop.f32.mrf.mxu1 }
 0x1e5   : > { %v5004_v0 = vadd.f32 %v2237_v9, %v2169_v25  ;;  %3700 = vmatmul.msk.bf16.gmra.mxu0 %vm3699_vm15, %v4072_v55  ;;  %vm492_vm15 = vcmp.eq.s32.totalorder %v4478_v41, %v4884_v26 }
 0x1e6   : > { %3724 = vmatmul.msk.bf16.gmra.mxu1 %vm3723_vm1, %v4072_v55  ;;  %vm3657_vm1 = vmpackc.low %vm503_vm0, %vm491_vm14  ;;  %vm516_vm14 = vcmp.eq.s32.totalorder %v4210_v47, %v4884_v26  ;;  %vm493_vm0 = vcmp.eq.s32.totalorder %v4478_v41, %v4932_v50 }
 0x1e7   : > { %vm3681_vm3 = vmpackc.low %vm504_vm2, %vm492_vm15  ;;  %vm505_vm2 = vcmp.eq.s32.totalorder %v4481_v42, %v4932_v50 }
 0x1e8   : > { %v2037_v12 = vpop.f32.mrf.mxu2  ;;  %vm3683_vm15 = vmpackc.low %vm528_vm11, %vm516_vm14  ;;  %vm517_vm14 = vcmp.eq.s32.totalorder %v4210_v47, %v4932_v50 }
 0x1e9   : > { %v2038_v49 = vadd.f32 %v2037_v12, %v4581_v21  ;;  %v2106_v43 = vpop.f32.mrf.mxu3  ;;  %v3936_v21 = vld [vmem:[%s5664_s1 + $0x298] sm:$0xff] }
 0x1ea   : > { %v2170_v18 = vpop.f32.mrf.mxu0  ;;  %2547 = vmatpush.bf16.msrb.mxu2 %v3936_v21 }
 0x1eb   : > { %v2107_v5 = vadd.f32 %v2106_v43, %v2038_v49  ;;  %v2171_v56 = vadd.f32 %v2170_v18, %v2102_v10  ;;  %v2239_v34 = vpop.f32.mrf.mxu1  ;;  %v3944_v10 = vld [vmem:[%s5664_s1 + $0x2d8] sm:$0xff] }
 0x1ec   : > { %2616 = vmatpush.bf16.msrb.mxu3 %v3944_v10 }
 0x1ed   : > { %v5017_v1 = vadd.f32 %v2239_v34, %v2171_v56  ;;  %3656 = vmatmul.msk.bf16.gmra.mxu2 %vm3655_vm5, %v4072_v55  ;;  %vm482_vm5 = vcmp.eq.s32.totalorder %v4430_v31, %v4935_v33 }
 0x1ee   : > { %3680 = vmatmul.msk.bf16.gmra.mxu3 %vm3679_vm7, %v4072_v55  ;;  %vm3703_vm7 = vmpackc.low %vm481_vm4, %vm469_vm6  ;;  %vm506_vm4 = vcmp.eq.s32.totalorder %v4481_v42, %v4935_v33  ;;  %vm539_vm6 = vcmp.eq.s32.totalorder %v4208_v46, %v4881_v40 }
 0x1ef   : > { %vm3727_vm9 = vmpackc.low %vm482_vm5, %vm470_vm8  ;;  %vm540_vm8 = vcmp.eq.s32.totalorder %v4208_v46, %v4884_v26 }
 0x1f0   : > { %v2040_v25 = vpop.f32.mrf.mxu2 }
 0x1f1   : > { %v2041_v9 = vadd.f32 %v2040_v25, %v4603_v29  ;;  %v2109_v12 = vpop.f32.mrf.mxu3 }
 0x1f2   : > { %v2173_v49 = vpop.f32.mrf.mxu0 }
 0x1f3   : > { %v2110_v43 = vadd.f32 %v2109_v12, %v2041_v9  ;;  %v2174_v18 = vadd.f32 %v2173_v49, %v2105_v13  ;;  %v2242_v56 = vpop.f32.mrf.mxu1 }
 0x1f5   : > { %v5036_v34 = vadd.f32 %v2242_v56, %v2174_v18  ;;  %3702 = vmatmul.msk.bf16.gmra.mxu0 %vm3701_vm12, %v4072_v55  ;;  %vm515_vm12 = vcmp.eq.s32.totalorder %v4210_v47, %v4881_v40 }
 0x1f6   : > { %3726 = vmatmul.msk.bf16.gmra.mxu1 %vm3725_vm13, %v4072_v55  ;;  %vm3659_vm13 = vmpackc.low %vm527_vm10, %vm515_vm12  ;;  %vm529_vm12 = vcmp.eq.s32.totalorder %v4227_v54, %v4932_v50 }
 0x1f8   : > { %v2042_v29 = vpop.f32.mrf.mxu2 }
 0x1f9   : > { %v2043_v21 = vadd.f32 %v2042_v29, %v4615_v37  ;;  %v2111_v10 = vpop.f32.mrf.mxu3 }
 0x1fa   : > { %v2175_v25 = vpop.f32.mrf.mxu0 }
 0x1fb   : > { %v2112_v13 = vadd.f32 %v2111_v10, %v2043_v21  ;;  %v2176_v9 = vadd.f32 %v2175_v25, %v2107_v5  ;;  %v2244_v12 = vpop.f32.mrf.mxu1 }
 0x1fd   : > { %v5049_v49 = vadd.f32 %v2244_v12, %v2176_v9  ;;  %3658 = vmatmul.msk.bf16.gmra.mxu2 %vm3657_vm1, %v4072_v55  ;;  %vm494_vm1 = vcmp.eq.s32.totalorder %v4478_v41, %v4935_v33 }
 0x1fe   : > { %3682 = vmatmul.msk.bf16.gmra.mxu3 %vm3681_vm3, %v4072_v55  ;;  %vm3705_vm3 = vmpackc.low %vm505_vm2, %vm493_vm0  ;;  %vm518_vm0 = vcmp.eq.s32.totalorder %v4210_v47, %v4935_v33  ;;  %vm563_vm2 = vcmp.eq.s32.totalorder %v4225_v53, %v4881_v40 }
 0x1ff   : > { %vm3729_vm5 = vmpackc.low %vm506_vm4, %vm494_vm1  ;;  %vm564_vm4 = vcmp.eq.s32.totalorder %v4225_v53, %v4884_v26 }
 0x200   : > { %v2045_v37 = vpop.f32.mrf.mxu2 }
 0x201   : > { %v2046_v18 = vadd.f32 %v2045_v37, %v4629_v59  ;;  %v2114_v56 = vpop.f32.mrf.mxu3  ;;  %v3935_v59 = vld [vmem:[%s5664_s1 + $0x290] sm:$0xff] }
 0x202   : > { %v2178_v5 = vpop.f32.mrf.mxu0  ;;  %2548 = vmatpush.bf16.msrb.mxu2 %v3935_v59 }
 0x203   : > { %v2115_v29 = vadd.f32 %v2114_v56, %v2046_v18  ;;  %v2179_v21 = vadd.f32 %v2178_v5, %v2110_v43  ;;  %v2247_v10 = vpop.f32.mrf.mxu1  ;;  %v3943_v43 = vld [vmem:[%s5664_s1 + $0x2d0] sm:$0xff] }
 0x204   : > { %2617 = vmatpush.bf16.msrb.mxu3 %v3943_v43 }
 0x205   : > { %v5062_v25 = vadd.f32 %v2247_v10, %v2179_v21  ;;  %3704 = vmatmul.msk.bf16.gmra.mxu0 %vm3703_vm7, %v4072_v55  ;;  %vm551_vm7 = vcmp.eq.s32.totalorder %v4223_v52, %v4881_v40 }
 0x206   : > { %3728 = vmatmul.msk.bf16.gmra.mxu1 %vm3727_vm9, %v4072_v55  ;;  %vm552_vm9 = vcmp.eq.s32.totalorder %v4223_v52, %v4884_v26  ;;  %vm3661_vm10 = vmpackc.low %vm551_vm7, %vm539_vm6 }
 0x207   : > { %vm3685_vm11 = vmpackc.low %vm552_vm9, %vm540_vm8  ;;  %vm541_vm8 = vcmp.eq.s32.totalorder %v4208_v46, %v4932_v50  ;;  %vm553_vm9 = vcmp.eq.s32.totalorder %v4223_v52, %v4932_v50 }
 0x208   : > { %v2047_v9 = vpop.f32.mrf.mxu2 }
 0x209   : > { %v2048_v12 = vadd.f32 %v2047_v9, %v4649_v17  ;;  %v2116_v37 = vpop.f32.mrf.mxu3 }
 0x20a   : > { %v2180_v18 = vpop.f32.mrf.mxu0 }
 0x20b   : > { %v2117_v56 = vadd.f32 %v2116_v37, %v2048_v12  ;;  %v2181_v5 = vadd.f32 %v2180_v18, %v2112_v13  ;;  %v2249_v21 = vpop.f32.mrf.mxu1 }
 0x20d   : > { %v5081_v10 = vadd.f32 %v2249_v21, %v2181_v5  ;;  %3660 = vmatmul.msk.bf16.gmra.mxu2 %vm3659_vm13, %v4072_v55  ;;  %vm530_vm13 = vcmp.eq.s32.totalorder %v4227_v54, %v4935_v33 }
 0x20e   : > { %3684 = vmatmul.msk.bf16.gmra.mxu3 %vm3683_vm15, %v4072_v55  ;;  %vm3707_vm15 = vmpackc.low %vm529_vm12, %vm517_vm14  ;;  %vm587_vm14 = vcmp.eq.s32.totalorder %v4244_v58, %v4881_v40 }
 0x20f   : > { %vm3731_vm1 = vmpackc.low %vm530_vm13, %vm518_vm0  ;;  %vm588_vm0 = vcmp.eq.s32.totalorder %v4244_v58, %v4884_v26 }
 0x210   : > { %v2050_v17 = vpop.f32.mrf.mxu2  ;;  %vm3709_vm12 = vmpackc.low %vm553_vm9, %vm541_vm8 }
 0x211   : > { %v2051_v59 = vadd.f32 %v2050_v17, %v4663_v27  ;;  %v2119_v43 = vpop.f32.mrf.mxu3 }
 0x212   : > { %v2183_v13 = vpop.f32.mrf.mxu0 }
 0x213   : > { %v2120_v9 = vadd.f32 %v2119_v43, %v2051_v59  ;;  %v2184_v12 = vadd.f32 %v2183_v13, %v2115_v29  ;;  %v2252_v37 = vpop.f32.mrf.mxu1 }
 0x215   : > { %v5094_v18 = vadd.f32 %v2252_v37, %v2184_v12  ;;  %3706 = vmatmul.msk.bf16.gmra.mxu0 %vm3705_vm3, %v4072_v55  ;;  %v3942_v12 = vld [vmem:[%s5664_s1 + $0x2c8] sm:$0xff]  ;;  %vm575_vm3 = vcmp.eq.s32.totalorder %v4249_v60, %v4881_v40 }
 0x216   : > { %3730 = vmatmul.msk.bf16.gmra.mxu1 %vm3729_vm5, %v4072_v55  ;;  %2618 = vmatpush.bf16.msrb.mxu3 %v3942_v12  ;;  %vm576_vm5 = vcmp.eq.s32.totalorder %v4249_v60, %v4884_v26  ;;  %vm3663_vm6 = vmpackc.low %vm575_vm3, %vm563_vm2 }
 0x217   : > { %vm3687_vm7 = vmpackc.low %vm576_vm5, %vm564_vm4  ;;  %vm565_vm4 = vcmp.eq.s32.totalorder %v4225_v53, %v4932_v50  ;;  %vm577_vm5 = vcmp.eq.s32.totalorder %v4249_v60, %v4932_v50 }
 0x218   : > { %v2052_v27 = vpop.f32.mrf.mxu2  ;;  %vm3711_vm8 = vmpackc.low %vm577_vm5, %vm565_vm4 }
 0x219   : > { %v2053_v5 = vadd.f32 %v2052_v27, %v4679_v38  ;;  %v2121_v21 = vpop.f32.mrf.mxu3  ;;  %v3934_v38 = vld [vmem:[%s5664_s1 + $0x288] sm:$0xff] }
 0x21a   : > { %v2185_v29 = vpop.f32.mrf.mxu0  ;;  %2549 = vmatpush.bf16.msrb.mxu2 %v3934_v38 }
 0x21b   : > { %v2122_v17 = vadd.f32 %v2121_v21, %v2053_v5  ;;  %v2186_v59 = vadd.f32 %v2185_v29, %v2117_v56  ;;  %v2254_v43 = vpop.f32.mrf.mxu1  ;;  %v3952_v56 = vld [vmem:[%s5665_s2 + $0x18] sm:$0xff] }
 0x21c   : > { %2770 = vmatpush.bf16.msrb.mxu0 %v3952_v56 }
 0x21d   : > { %v5107_v13 = vadd.f32 %v2254_v43, %v2186_v59  ;;  %3662 = vmatmul.msk.bf16.gmra.mxu2 %vm3661_vm10, %v4072_v55  ;;  %vm542_vm10 = vcmp.eq.s32.totalorder %v4208_v46, %v4935_v33 }
 0x21e   : > { %3686 = vmatmul.msk.bf16.gmra.mxu3 %vm3685_vm11, %v4072_v55  ;;  %vm554_vm11 = vcmp.eq.s32.totalorder %v4223_v52, %v4935_v33 }
 0x21f   : > { %vm3733_vm13 = vmpackc.low %vm554_vm11, %vm542_vm10  ;;  %vm611_vm10 = vcmp.eq.s32.totalorder %v4264_v63, %v4881_v40  ;;  %vm623_vm11 = vcmp.eq.s32.totalorder %v4257_v62, %v4881_v40 }
 0x220   : > { %v2055_v37 = vpop.f32.mrf.mxu2 }
 0x221   : > { %v2056_v27 = vadd.f32 %v2055_v37, %v4700_v15  ;;  %v2124_v5 = vpop.f32.mrf.mxu3 }
 0x222   : > { %v2188_v21 = vpop.f32.mrf.mxu0 }
 0x223   : > { %v2125_v29 = vadd.f32 %v2124_v5, %v2056_v27  ;;  %v2189_v59 = vadd.f32 %v2188_v21, %v2120_v9  ;;  %v2257_v43 = vpop.f32.mrf.mxu1 }
 0x225   : > { %v5129_v15 = vadd.f32 %v2257_v43, %v2189_v59  ;;  %3708 = vmatmul.msk.bf16.gmra.mxu0 %vm3707_vm15, %v4072_v55  ;;  %vm599_vm15 = vcmp.eq.s32.totalorder %v4242_v57, %v4881_v40 }
 0x226   : > { %3732 = vmatmul.msk.bf16.gmra.mxu1 %vm3731_vm1, %v4072_v55  ;;  %vm600_vm1 = vcmp.eq.s32.totalorder %v4242_v57, %v4884_v26  ;;  %vm3665_vm2 = vmpackc.low %vm599_vm15, %vm587_vm14 }
 0x227   : > { %vm3689_vm3 = vmpackc.low %vm600_vm1, %vm588_vm0  ;;  %vm589_vm0 = vcmp.eq.s32.totalorder %v4244_v58, %v4932_v50  ;;  %vm601_vm1 = vcmp.eq.s32.totalorder %v4242_v57, %v4932_v50 }
 0x228   : > { %v2057_v38 = vpop.f32.mrf.mxu2  ;;  %vm3667_vm14 = vmpackc.low %vm623_vm11, %vm611_vm10 }
 0x229   : > { %v2058_v12 = vadd.f32 %v2057_v38, %v4716_v30  ;;  %v2126_v56 = vpop.f32.mrf.mxu3  ;;  %vm3713_vm4 = vmpackc.low %vm601_vm1, %vm589_vm0 }
 0x22a   : > { %v2190_v9 = vpop.f32.mrf.mxu0 }
 0x22b   : > { %v2127_v37 = vadd.f32 %v2126_v56, %v2058_v12  ;;  %v2191_v27 = vadd.f32 %v2190_v9, %v2122_v17  ;;  %v2259_v5 = vpop.f32.mrf.mxu1  ;;  %v3933_v9 = vld [vmem:[%s5664_s1 + $0x280] sm:$0xff] }
 0x22c   : > { %2550 = vmatpush.bf16.msrb.mxu2 %v3933_v9 }
 0x22d   : > { %v5142_v21 = vadd.f32 %v2259_v5, %v2191_v27  ;;  %3664 = vmatmul.msk.bf16.gmra.mxu2 %vm3663_vm6, %v4072_v55  ;;  %v3941_v27 = vld [vmem:[%s5664_s1 + $0x2c0] sm:$0xff]  ;;  %vm566_vm6 = vcmp.eq.s32.totalorder %v4225_v53, %v4935_v33 }
 0x22e   : > { %3688 = vmatmul.msk.bf16.gmra.mxu3 %vm3687_vm7, %v4072_v55  ;;  %vm578_vm7 = vcmp.eq.s32.totalorder %v4249_v60, %v4935_v33 }
 0x22f   : > { %2619 = vmatpush.bf16.msrb.mxu3 %v3941_v27  ;;  %vm3735_vm9 = vmpackc.low %vm578_vm7, %vm566_vm6  ;;  %vm635_vm6 = vcmp.eq.s32.totalorder %v4251_v61, %v4881_v40  ;;  %vm647_vm7 = vcmp.eq.s32.totalorder %v4293_v6, %v4881_v40 }
 0x230   : > { %v2276_v30 = vpop.f32.mrf.mxu2  ;;  %vm3669_vm10 = vmpackc.low %vm647_vm7, %vm635_vm6 }
 0x231   : > { %v2277_v59 = vadd.f32 %v2276_v30, %v4770_v35  ;;  %v2345_v43 = vpop.f32.mrf.mxu3 }
 0x232   : > { %v2193_v17 = vpop.f32.mrf.mxu0 }
 0x233   : > { %v5155_v38 = vadd.f32 %v2345_v43, %v2277_v59  ;;  %v2194_v12 = vadd.f32 %v2193_v17, %v2125_v29  ;;  %v2262_v56 = vpop.f32.mrf.mxu1 }
 0x235   : > { %v5157_v35 = vadd.f32 %v2262_v56, %v2194_v12  ;;  %3710 = vmatmul.msk.bf16.gmra.mxu0 %vm3709_vm12, %v4072_v55  ;;  %vm612_vm12 = vcmp.eq.s32.totalorder %v4264_v63, %v4884_v26 }
 0x236   : > { %3734 = vmatmul.msk.bf16.gmra.mxu1 %vm3733_vm13, %v4072_v55  ;;  %vm624_vm13 = vcmp.eq.s32.totalorder %v4257_v62, %v4884_v26 }
 0x237   : > { %vm3691_vm15 = vmpackc.low %vm624_vm13, %vm612_vm12  ;;  %vm613_vm12 = vcmp.eq.s32.totalorder %v4264_v63, %v4932_v50  ;;  %vm625_vm13 = vcmp.eq.s32.totalorder %v4257_v62, %v4932_v50 }
 0x238   : > { %v2278_v5 = vpop.f32.mrf.mxu2  ;;  %vm3715_vm0 = vmpackc.low %vm625_vm13, %vm613_vm12 }
 0x239   : > { %v2279_v29 = vadd.f32 %v2278_v5, %v4786_v28  ;;  %v2347_v30 = vpop.f32.mrf.mxu3 }
 0x23a   : > { %v2195_v59 = vpop.f32.mrf.mxu0 }
 0x23b   : > { %v5176_v43 = vadd.f32 %v2347_v30, %v2279_v29  ;;  %v2196_v17 = vadd.f32 %v2195_v59, %v2127_v37  ;;  %v2264_v12 = vpop.f32.mrf.mxu1 }
 0x23d   : > { %v5178_v28 = vadd.f32 %v2264_v12, %v2196_v17  ;;  %3666 = vmatmul.msk.bf16.gmra.mxu2 %vm3665_vm2, %v4072_v55  ;;  %vm590_vm2 = vcmp.eq.s32.totalorder %v4244_v58, %v4935_v33 }
 0x23e   : > { %3690 = vmatmul.msk.bf16.gmra.mxu3 %vm3689_vm3, %v4072_v55  ;;  %vm602_vm3 = vcmp.eq.s32.totalorder %v4242_v57, %v4935_v33 }
 0x23f   : > { %vm3737_vm5 = vmpackc.low %vm602_vm3, %vm590_vm2 }
 0x240   : > { %v2281_v56 = vpop.f32.mrf.mxu2 }
 0x241   : > { %v2282_v9 = vadd.f32 %v2281_v56, %v4814_v4  ;;  %v2350_v27 = vpop.f32.mrf.mxu3 }
 0x243   : > { %v5191_v37 = vadd.f32 %v2350_v27, %v2282_v9 }
 0x245   : > { %3712 = vmatmul.msk.bf16.gmra.mxu0 %vm3711_vm8, %v4072_v55  ;;  %vm636_vm8 = vcmp.eq.s32.totalorder %v4251_v61, %v4884_v26 }
 0x246   : > { %3736 = vmatmul.msk.bf16.gmra.mxu1 %vm3735_vm9, %v4072_v55  ;;  %vm648_vm9 = vcmp.eq.s32.totalorder %v4293_v6, %v4884_v26  ;;  %v5251_v26 = vadd.s32 1280, %v4212_v48 }
 0x247   : > { %vm3693_vm11 = vmpackc.low %vm648_vm9, %vm636_vm8  ;;  %vm637_vm8 = vcmp.eq.s32.totalorder %v4251_v61, %v4932_v50  ;;  %vm649_vm9 = vcmp.eq.s32.totalorder %v4293_v6, %v4932_v50 }
 0x248   : > { %v2283_v4 = vpop.f32.mrf.mxu2  ;;  %vm375_vm2 = vcmp.eq.s32.totalorder %v4275_v3, %v5251_v26  ;;  %vm387_vm3 = vcmp.eq.s32.totalorder %v4273_v2, %v5251_v26  ;;  %vm3717_vm12 = vmpackc.low %vm649_vm9, %vm637_vm8 }
 0x249   : > { %v2284_v5 = vadd.f32 %v2283_v4, %v4839_v23  ;;  %v2352_v29 = vpop.f32.mrf.mxu3  ;;  %v3951_v23 = vld [vmem:[%s5665_s2 + $0x10] sm:$0xff]  ;;  %vm3743_vm6 = vmpackc.low %vm387_vm3, %vm375_vm2 }
 0x24a   : > { %2771 = vmatpush.bf16.msrb.mxu0 %v3951_v23  ;;  %v5254_v23 = vadd.s32 1408, %v4212_v48 }
 0x24b   : > { %v5204_v30 = vadd.f32 %v2352_v29, %v2284_v5 }
 0x24c   : > { %vm400_vm2 = vcmp.eq.s32.totalorder %v4309_v8, %v5254_v23  ;;  %vm436_vm8 = vcmp.eq.s32.totalorder %v4345_v14, %v5254_v23 }
 0x24d   : > { %3668 = vmatmul.msk.bf16.gmra.mxu2 %vm3667_vm14, %v4072_v55  ;;  %vm614_vm14 = vcmp.eq.s32.totalorder %v4264_v63, %v4935_v33 }
 0x24e   : > { %3692 = vmatmul.msk.bf16.gmra.mxu3 %vm3691_vm15, %v4072_v55  ;;  %vm626_vm15 = vcmp.eq.s32.totalorder %v4257_v62, %v4935_v33 }
 0x24f   : > { %vm3739_vm1 = vmpackc.low %vm626_vm15, %vm614_vm14  ;;  %vm411_vm14 = vcmp.eq.s32.totalorder %v4304_v7, %v5251_v26  ;;  %vm412_vm15 = vcmp.eq.s32.totalorder %v4304_v7, %v5254_v23 }
 0x250   : > { %v2286_v59 = vpop.f32.mrf.mxu2  ;;  %vm3769_vm3 = vmpackc.low %vm412_vm15, %vm400_vm2  ;;  %vm471_vm2 = vcmp.eq.s32.totalorder %v4447_v36, %v5251_v26 }
 0x251   : > { %v2287_v17 = vadd.f32 %v2286_v59, %v4864_v32  ;;  %v2355_v12 = vpop.f32.mrf.mxu3 }
 0x253   : > { %v5220_v56 = vadd.f32 %v2355_v12, %v2287_v17 }
 0x255   : > { %3714 = vmatmul.msk.bf16.gmra.mxu0 %vm3713_vm4, %v4072_v55  ;;  %vm376_vm4 = vcmp.eq.s32.totalorder %v4275_v3, %v5254_v23 }
 0x256   : > { %3738 = vmatmul.msk.bf16.gmra.mxu1 %vm3737_vm5, %v4072_v55  ;;  %vm388_vm5 = vcmp.eq.s32.totalorder %v4273_v2, %v5254_v23 }
 0x257   : > { %vm3767_vm7 = vmpackc.low %vm388_vm5, %vm376_vm4  ;;  %vm423_vm4 = vcmp.eq.s32.totalorder %v4334_v11, %v5251_v26  ;;  %vm424_vm5 = vcmp.eq.s32.totalorder %v4334_v11, %v5254_v23 }
 0x258   : > { %v2288_v32 = vpop.f32.mrf.mxu2  ;;  %vm3771_vm9 = vmpackc.low %vm436_vm8, %vm424_vm5  ;;  %vm507_vm8 = vcmp.eq.s32.totalorder %v4481_v42, %v5251_v26 }
 0x259   : > { %v2289_v9 = vadd.f32 %v2288_v32, %v4895_v39  ;;  %v2357_v27 = vpop.f32.mrf.mxu3 }
 0x25b   : > { %v5233_v4 = vadd.f32 %v2357_v27, %v2289_v9 }
 0x25d   : > { %3670 = vmatmul.msk.bf16.gmra.mxu2 %vm3669_vm10, %v4072_v55  ;;  %vm638_vm10 = vcmp.eq.s32.totalorder %v4251_v61, %v4935_v33 }
 0x25e   : > { %3694 = vmatmul.msk.bf16.gmra.mxu3 %vm3693_vm11, %v4072_v55  ;;  %vm650_vm11 = vcmp.eq.s32.totalorder %v4293_v6, %v4935_v33  ;;  %v3950_v33 = vld [vmem:[%s5665_s2 + $0x8] sm:$0xff] }
 0x25f   : > { %vm3741_vm13 = vmpackc.low %vm650_vm11, %vm638_vm10  ;;  %2772 = vmatpush.bf16.msrb.mxu0 %v3950_v33  ;;  %vm447_vm10 = vcmp.eq.s32.totalorder %v4378_v20, %v5251_v26  ;;  %vm459_vm11 = vcmp.eq.s32.totalorder %v4376_v19, %v5251_v26 }
 0x260   : > { %v2291_v39 = vpop.f32.mrf.mxu2 }
 0x261   : > { %v2292_v5 = vadd.f32 %v2291_v39, %v4908_v24  ;;  %v2360_v29 = vpop.f32.mrf.mxu3 }
 0x263   : > { %v5246_v40 = vadd.f32 %v2360_v29, %v2292_v5 }
 0x265   : > { %3716 = vmatmul.msk.bf16.gmra.mxu0 %vm3715_vm0, %v4072_v55  ;;  %vm399_vm0 = vcmp.eq.s32.totalorder %v4309_v8, %v5251_v26 }
 0x266   : > { %3740 = vmatmul.msk.bf16.gmra.mxu1 %vm3739_vm1, %v4072_v55  ;;  %vm3745_vm1 = vmpackc.low %vm411_vm14, %vm399_vm0  ;;  %vm483_vm0 = vcmp.eq.s32.totalorder %v4430_v31, %v5251_v26 }
 0x267   : > { %vm3749_vm14 = vmpackc.low %vm459_vm11, %vm447_vm10  ;;  %vm508_vm10 = vcmp.eq.s32.totalorder %v4481_v42, %v5254_v23 }
 0x268   : > { %v2293_v24 = vpop.f32.mrf.mxu2 }
 0x269   : > { %v2294_v59 = vadd.f32 %v2293_v24, %v4921_v22  ;;  %v2362_v17 = vpop.f32.mrf.mxu3 }
 0x26b   : > { %v5265_v12 = vadd.f32 %v2362_v17, %v2294_v59 }
 0x26d   : > { %3744 = vmatmul.msk.bf16.vlgmr.msrb.gmra.mxu2 %vm3743_vm6, %v4072_v55  ;;  %vm435_vm6 = vcmp.eq.s32.totalorder %v4345_v14, %v5251_v26 }
 0x26e   : > { %3768 = vmatmul.msk.bf16.vlgmr.msrb.gmra.mxu3 %vm3767_vm7, %v4072_v55  ;;  %vm3747_vm7 = vmpackc.low %vm435_vm6, %vm423_vm4  ;;  %vm472_vm4 = vcmp.eq.s32.totalorder %v4447_v36, %v5254_v23  ;;  %vm495_vm6 = vcmp.eq.s32.totalorder %v4478_v41, %v5251_v26 }
 0x270   : > { %v2296_v48 = vpop.f32.mrf.mxu2 }
 0x271   : > { %v2297_v22 = vadd.f32 %v2296_v48, %v4946_v51  ;;  %v2365_v32 = vpop.f32.mrf.mxu3 }
 0x273   : > { %v5278_v2 = vadd.f32 %v2365_v32, %v2297_v22 }
 0x275   : > { %3718 = vmatmul.msk.bf16.gmra.mxu0 %vm3717_vm12, %v4072_v55  ;;  %vm448_vm12 = vcmp.eq.s32.totalorder %v4378_v20, %v5254_v23 }
 0x276   : > { %3742 = vmatmul.msk.bf16.gmra.mxu1 %vm3741_vm13, %v4072_v55  ;;  %vm460_vm13 = vcmp.eq.s32.totalorder %v4376_v19, %v5254_v23 }
 0x277   : > { %vm3773_vm15 = vmpackc.low %vm460_vm13, %vm448_vm12  ;;  %vm531_vm12 = vcmp.eq.s32.totalorder %v4227_v54, %v5251_v26  ;;  %vm532_vm13 = vcmp.eq.s32.totalorder %v4227_v54, %v5254_v23 }
 0x278   : > { %v2298_v3 = vpop.f32.mrf.mxu2 }
 0x279   : > { %v2299_v51 = vadd.f32 %v2298_v3, %v4959_v45  ;;  %v2367_v9 = vpop.f32.mrf.mxu3 }
 0x27b   : > { %v5287_v50 = vadd.f32 %v2367_v9, %v2299_v51 }
 0x27d   : > { %3746 = vmatmul.msk.bf16.gmra.mxu2 %vm3745_vm1, %v4072_v55  ;;  %vm484_vm1 = vcmp.eq.s32.totalorder %v4430_v31, %v5254_v23  ;;  %v3949_v31 = vld [vmem:[%s5665_s2] sm:$0xff] }
 0x27e   : > { %3770 = vmatmul.msk.bf16.gmra.mxu3 %vm3769_vm3, %v4072_v55  ;;  %vm3751_vm3 = vmpackc.low %vm483_vm0, %vm471_vm2  ;;  %2773 = vmatpush.bf16.msrb.mxu0 %v3949_v31  ;;  %vm520_vm0 = vcmp.eq.s32.totalorder %v4210_v47, %v5254_v23  ;;  %vm543_vm2 = vcmp.eq.s32.totalorder %v4208_v46, %v5251_v26 }
 0x27f   : > { %vm3775_vm5 = vmpackc.low %vm484_vm1, %vm472_vm4  ;;  %vm544_vm4 = vcmp.eq.s32.totalorder %v4208_v46, %v5254_v23 }
 0x280   : > { %v2301_v45 = vpop.f32.mrf.mxu2  ;;  %vm3779_vm1 = vmpackc.low %vm532_vm13, %vm520_vm0  ;;  %vm592_vm0 = vcmp.eq.s32.totalorder %v4244_v58, %v5254_v23 }
 0x281   : > { %v2302_v7 = vadd.f32 %v2301_v45, %v4972_v44  ;;  %v2370_v27 = vpop.f32.mrf.mxu3  ;;  %v5313_v44 = vpop.f32.mrf.mxu0 }
 0x283   : > { %v5299_v39 = vadd.f32 %v2370_v27, %v2302_v7 }
 0x288   : > { %v2303_v5 = vpop.f32.mrf.mxu2 }
 0x289   : > { %v2304_v29 = vadd.f32 %v2303_v5, %v4991_v16  ;;  %v2372_v8 = vpop.f32.mrf.mxu3  ;;  %v5319_v48 = vpop.f32.mrf.mxu0 }
 0x28b   : > { %v5306_v24 = vadd.f32 %v2372_v8, %v2304_v29 }
 0x28d   : > { %3748 = vmatmul.msk.bf16.gmra.mxu2 %vm3747_vm7, %v4072_v55  ;;  %vm496_vm7 = vcmp.eq.s32.totalorder %v4478_v41, %v5254_v23 }
 0x28e   : > { %3772 = vmatmul.msk.bf16.gmra.mxu3 %vm3771_vm9, %v4072_v55  ;;  %vm3753_vm9 = vmpackc.low %vm507_vm8, %vm495_vm6  ;;  %vm567_vm8 = vcmp.eq.s32.totalorder %v4225_v53, %v5251_v26 }
 0x28f   : > { %vm3777_vm11 = vmpackc.low %vm508_vm10, %vm496_vm7  ;;  %vm568_vm10 = vcmp.eq.s32.totalorder %v4225_v53, %v5254_v23  ;;  %v2417_v53 = vadd.f32 %v5319_v48, %v5176_v43 }
 0x290   : > { %v2306_v16 = vpop.f32.mrf.mxu2 }
 0x291   : > { %v2307_v59 = vadd.f32 %v2306_v16, %v5004_v0  ;;  %v2375_v11 = vpop.f32.mrf.mxu3  ;;  %v5335_v9 = vpop.f32.mrf.mxu0 }
 0x293   : > { %v5317_v17 = vadd.f32 %v2375_v11, %v2307_v59 }
 0x298   : > { %v2308_v22 = vpop.f32.mrf.mxu2 }
 0x299   : > { %v2309_v32 = vadd.f32 %v2308_v22, %v5017_v1  ;;  %v2377_v3 = vpop.f32.mrf.mxu3 }
 0x29b   : > { %v5330_v14 = vadd.f32 %v2377_v3, %v2309_v32 }
 0x29d   : > { %3750 = vmatmul.msk.bf16.gmra.mxu2 %vm3749_vm14, %v4072_v55  ;;  %vm519_vm14 = vcmp.eq.s32.totalorder %v4210_v47, %v5251_v26 }
 0x29e   : > { %3774 = vmatmul.msk.bf16.gmra.mxu3 %vm3773_vm15, %v4072_v55  ;;  %vm3755_vm15 = vmpackc.low %vm531_vm12, %vm519_vm14  ;;  %vm591_vm14 = vcmp.eq.s32.totalorder %v4244_v58, %v5251_v26 }
 0x2a0   : > { %v2311_v0 = vpop.f32.mrf.mxu2 }
 0x2a1   : > { %v2312_v1 = vadd.f32 %v2311_v0, %v5036_v34  ;;  %v2380_v51 = vpop.f32.mrf.mxu3  ;;  %v5348_v34 = vpop.f32.mrf.mxu0 }
 0x2a3   : > { %v5337_v33 = vadd.f32 %v2380_v51, %v2312_v1  ;;  %v3959_v1 = vld [vmem:[%s5667_s4 + $0x30] sm:$0xff] }
 0x2a8   : > { %v2313_v20 = vpop.f32.mrf.mxu2 }
 0x2a9   : > { %v2314_v45 = vadd.f32 %v2313_v20, %v5049_v49  ;;  %v2382_v19 = vpop.f32.mrf.mxu3  ;;  %v3960_v49 = vld [vmem:[%s5667_s4 + $0x38] sm:$0xff]  ;;  %v5363_v8 = vpop.f32.mrf.mxu0 }
 0x2aa   : > { %2939 = vmatpush.bf16.msrb.mxu1 %v3960_v49 }
 0x2ab   : > { %v5344_v7 = vadd.f32 %v2382_v19, %v2314_v45 }
 0x2ad   : > { %3752 = vmatmul.msk.bf16.gmra.mxu2 %vm3751_vm3, %v4072_v55  ;;  %vm555_vm3 = vcmp.eq.s32.totalorder %v4223_v52, %v5251_v26 }
 0x2ae   : > { %3776 = vmatmul.msk.bf16.gmra.mxu3 %vm3775_vm5, %v4072_v55  ;;  %2940 = vmatpush.bf16.msrb.mxu1 %v3959_v1  ;;  %vm556_vm5 = vcmp.eq.s32.totalorder %v4223_v52, %v5254_v23  ;;  %vm3757_vm6 = vmpackc.low %vm555_vm3, %vm543_vm2  ;;  %vm2729_vm3 = vcmask 523264  }
 0x2af   : > { %vm3781_vm7 = vmpackc.low %vm556_vm5, %vm544_vm4  ;;  %vm615_vm5 = vcmp.eq.s32.totalorder %v4264_v63, %v5251_v26 }
 0x2b0   : > { %v2316_v27 = vpop.f32.mrf.mxu2 }
 0x2b1   : > { %v2317_v5 = vadd.f32 %v2316_v27, %v5062_v25  ;;  %v2385_v29 = vpop.f32.mrf.mxu3  ;;  %v5378_v25 = vpop.f32.mrf.mxu1 }
 0x2b3   : > { %v5361_v36 = vadd.f32 %v2385_v29, %v2317_v5 }
 0x2b8   : > { %v2318_v16 = vpop.f32.mrf.mxu2 }
 0x2b9   : > { %v2319_v59 = vadd.f32 %v2318_v16, %v5081_v10  ;;  %v2387_v11 = vpop.f32.mrf.mxu3  ;;  %v5380_v10 = vpop.f32.mrf.mxu0 }
 0x2ba   : > { %v2485_v51 = vpop.f32.mrf.mxu1 }
 0x2bb   : > { %v5370_v22 = vadd.f32 %v2387_v11, %v2319_v59 }
 0x2bd   : > { %3754 = vmatmul.msk.bf16.gmra.mxu2 %vm3753_vm9, %v4072_v55  ;;  %vm579_vm9 = vcmp.eq.s32.totalorder %v4249_v60, %v5251_v26 }
 0x2be   : > { %3778 = vmatmul.msk.bf16.gmra.mxu3 %vm3777_vm11, %v4072_v55  ;;  %vm580_vm11 = vcmp.eq.s32.totalorder %v4249_v60, %v5254_v23  ;;  %vm3759_vm12 = vmpackc.low %vm579_vm9, %vm567_vm8  ;;  %v3957_v60 = vld [vmem:[%s5667_s4 + $0x20] sm:$0xff]  ;;  %vm628_vm8 = vcmp.eq.s32.totalorder %v4257_v62, %v5254_v23 }
 0x2bf   : > { %vm3783_vm13 = vmpackc.low %vm580_vm11, %vm568_vm10  ;;  %vm639_vm11 = vcmp.eq.s32.totalorder %v4251_v61, %v5251_v26 }
 0x2c0   : > { %v2321_v32 = vpop.f32.mrf.mxu2 }
 0x2c1   : > { %v2322_v41 = vadd.f32 %v2321_v32, %v5094_v18  ;;  %v2390_v3 = vpop.f32.mrf.mxu3  ;;  %v5391_v19 = vpop.f32.mrf.mxu0 }
 0x2c2   : > { %v5404_v27 = vpop.f32.mrf.mxu1 }
 0x2c3   : > { %v5383_v0 = vadd.f32 %v2390_v3, %v2322_v41 }
 0x2c8   : > { %v2323_v42 = vpop.f32.mrf.mxu2 }
 0x2c9   : > { %v2324_v20 = vadd.f32 %v2323_v42, %v5107_v13  ;;  %v2392_v45 = vpop.f32.mrf.mxu3  ;;  %v5408_v5 = vpop.f32.mrf.mxu0 }
 0x2cb   : > { %v5395_v18 = vadd.f32 %v2392_v45, %v2324_v20 }
 0x2cd   : > { %3756 = vmatmul.msk.bf16.gmra.mxu2 %vm3755_vm15, %v4072_v55  ;;  %vm603_vm15 = vcmp.eq.s32.totalorder %v4242_v57, %v5251_v26 }
 0x2ce   : > { %3780 = vmatmul.msk.bf16.gmra.mxu3 %vm3779_vm1, %v4072_v55  ;;  %vm604_vm1 = vcmp.eq.s32.totalorder %v4242_v57, %v5254_v23  ;;  %vm3761_vm2 = vmpackc.low %vm603_vm15, %vm591_vm14  ;;  %v2420_v57 = vadd.f32 %v5335_v9, %v5191_v37  ;;  %vm652_vm14 = vcmp.eq.s32.totalorder %v4293_v6, %v5254_v23 }
 0x2cf   : > { %vm3785_vm4 = vmpackc.low %vm604_vm1, %vm592_vm0 }
 0x2d0   : > { %v2326_v13 = vpop.f32.mrf.mxu2 }
 0x2d1   : > { %v2327_v49 = vadd.f32 %v2326_v13, %v5129_v15  ;;  %v2395_v31 = vpop.f32.mrf.mxu3  ;;  %v2490_v15 = vpop.f32.mrf.mxu1  ;;  %v2415_v13 = vadd.f32 %v5313_v44, %v5155_v38 }
 0x2d2   : > { %v5425_v11 = vpop.f32.mrf.mxu0 }
 0x2d3   : > { %v5406_v54 = vadd.f32 %v2395_v31, %v2327_v49 }
 0x2d8   : > { %v2328_v29 = vpop.f32.mrf.mxu2 }
 0x2d9   : > { %v2329_v16 = vadd.f32 %v2328_v29, %v5142_v21  ;;  %v2397_v59 = vpop.f32.mrf.mxu3  ;;  %v3958_v21 = vld [vmem:[%s5667_s4 + $0x28] sm:$0xff]  ;;  %v5431_v3 = vpop.f32.mrf.mxu1 }
 0x2da   : > { %2941 = vmatpush.bf16.msrb.mxu1 %v3958_v21  ;;  %v5433_v1 = vpop.f32.mrf.mxu0 }
 0x2db   : > { %v5419_v47 = vadd.f32 %v2397_v59, %v2329_v16  ;;  %v2484_v16 = vadd.f32 %v5378_v25, %v2415_v13  ;;  %v2486_v59 = vadd.f32 %v2485_v51, %v2417_v53 }
 0x2dd   : > { %3758 = vmatmul.msk.bf16.gmra.mxu2 %vm3757_vm6, %v4072_v55  ;;  %vm627_vm6 = vcmp.eq.s32.totalorder %v4257_v62, %v5251_v26 }
 0x2de   : > { %3782 = vmatmul.msk.bf16.gmra.mxu3 %vm3781_vm7, %v4072_v55  ;;  %2942 = vmatpush.bf16.msrb.mxu1 %v3957_v60  ;;  %vm616_vm7 = vcmp.eq.s32.totalorder %v4264_v63, %v5254_v23  ;;  %vm3763_vm9 = vmpackc.low %vm627_vm6, %vm615_vm5 }
 0x2df   : > { %vm3787_vm10 = vmpackc.low %vm628_vm8, %vm616_vm7 }
 0x2e0   : > { %v2331_v46 = vpop.f32.mrf.mxu2 }
 0x2e1   : > { %v2332_v32 = vadd.f32 %v2331_v46, %v5157_v35  ;;  %v2400_v52 = vpop.f32.mrf.mxu3  ;;  %v2495_v49 = vpop.f32.mrf.mxu1 }
 0x2e2   : > { %v5450_v29 = vpop.f32.mrf.mxu0 }
 0x2e3   : > { %v5429_v41 = vadd.f32 %v2400_v52, %v2332_v32 }
 0x2e8   : > { %v2333_v42 = vpop.f32.mrf.mxu2 }
 0x2e9   : > { %v2334_v20 = vadd.f32 %v2333_v42, %v5178_v28  ;;  %v2402_v45 = vpop.f32.mrf.mxu3  ;;  %v5466_v38 = vpop.f32.mrf.mxu1  ;;  %v2422_v42 = vadd.f32 %v5348_v34, %v5204_v30  ;;  %v3956_v34 = vld [vmem:[%s5667_s4 + $0x18] sm:$0xff] }
 0x2ea   : > { %v5468_v48 = vpop.f32.mrf.mxu0  ;;  %2943 = vmatpush.bf16.msrb.mxu1 %v3956_v34 }
 0x2eb   : > { %v5444_v35 = vadd.f32 %v2402_v45, %v2334_v20  ;;  %v2489_v20 = vadd.f32 %v5404_v27, %v2420_v57  ;;  %v2491_v13 = vadd.f32 %v2490_v15, %v2422_v42  ;;  %v2425_v15 = vadd.f32 %v5363_v8, %v5220_v56 }
 0x2ed   : > { %3760 = vmatmul.msk.bf16.gmra.mxu2 %vm3759_vm12, %v4072_v55  ;;  %vm651_vm12 = vcmp.eq.s32.totalorder %v4293_v6, %v5251_v26 }
 0x2ee   : > { %3784 = vmatmul.msk.bf16.gmra.mxu3 %vm3783_vm13, %v4072_v55  ;;  %vm640_vm13 = vcmp.eq.s32.totalorder %v4251_v61, %v5254_v23  ;;  %vm3765_vm15 = vmpackc.low %vm651_vm12, %vm639_vm11  ;;  %v2432_v61 = vadd.f32 %v5408_v5, %v5265_v12  ;;  %v3955_v23 = vld [vmem:[%s5667_s4 + $0x10] sm:$0xff] }
 0x2ef   : > { %vm3789_vm0 = vmpackc.low %vm652_vm14, %vm640_vm13  ;;  %2944 = vmatpush.bf16.msrb.mxu1 %v3955_v23 }
 0x2f0   : > { %v2552_v28 = vpop.f32.mrf.mxu2 }
 0x2f1   : > { %v2621_v31 = vpop.f32.mrf.mxu3  ;;  %v2553_v21 = vadd.f32 %v2552_v28, %v2484_v16  ;;  %v2500_v45 = vpop.f32.mrf.mxu1 }
 0x2f2   : > { %v5478_v28 = vpop.f32.mrf.mxu0 }
 0x2f3   : > { %v2622_v43 = vadd.f32 %v2621_v31, %v2553_v21  ;;  %v2427_v21 = vadd.f32 %v5380_v10, %v5233_v4  ;;  %v2430_v10 = vadd.f32 %v5391_v19, %v5246_v40 }
 0x2f8   : > { %v2554_v46 = vpop.f32.mrf.mxu2 }
 0x2f9   : > { %v2555_v32 = vadd.f32 %v2554_v46, %v2486_v59  ;;  %v2623_v52 = vpop.f32.mrf.mxu3  ;;  %v2503_v27 = vpop.f32.mrf.mxu1  ;;  %v2494_v46 = vadd.f32 %v5431_v3, %v2425_v15 }
 0x2fa   : > { %v5494_v63 = vpop.f32.mrf.mxu0 }
 0x2fb   : > { %v2624_v44 = vadd.f32 %v2623_v52, %v2555_v32  ;;  %v2496_v32 = vadd.f32 %v2495_v49, %v2427_v21 }
 0x2fd   : > { %v2681_v25 = vpack.c.bf16 %v2624_v44, %v2622_v43  ;;  %3762 = vmatmul.msk.bf16.gmra.mxu2 %vm3761_vm2, %v4072_v55 }
 0x2fe   : > { %3786 = vmatmul.msk.bf16.gmra.mxu3 %vm3785_vm4, %v4072_v55 }
 0x2ff   : > { %3807 = vmatmul.msk.bf16.vlgmr.msrb.gmra.mxu0 %vm2729_vm3, %v2681_v25 }
 0x300   : > { %v2557_v58 = vpop.f32.mrf.mxu2 }
 0x301   : > { %v2626_v51 = vpop.f32.mrf.mxu3  ;;  %v2558_v31 = vadd.f32 %v2557_v58, %v2489_v20  ;;  %v2505_v44 = vpop.f32.mrf.mxu1 }
 0x302   : > { %v5505_v57 = vpop.f32.mrf.mxu0 }
 0x303   : > { %v2627_v37 = vadd.f32 %v2626_v51, %v2558_v31  ;;  %v2499_v51 = vadd.f32 %v5466_v38, %v2430_v10  ;;  %v2437_v38 = vadd.f32 %v5433_v1, %v5287_v50 }
 0x308   : > { %v2559_v53 = vpop.f32.mrf.mxu2 }
 0x309   : > { %v2560_v60 = vadd.f32 %v2559_v53, %v2491_v13  ;;  %v2628_v16 = vpop.f32.mrf.mxu3  ;;  %v2508_v6 = vpop.f32.mrf.mxu1 }
 0x30a   : > { %v5521_v49 = vpop.f32.mrf.mxu0 }
 0x30b   : > { %v2629_v30 = vadd.f32 %v2628_v16, %v2560_v60  ;;  %v2435_v16 = vadd.f32 %v5425_v11, %v5278_v2  ;;  %v3954_v2 = vld [vmem:[%s5667_s4 + $0x8] sm:$0xff]  ;;  %v2440_v11 = vadd.f32 %v5450_v29, %v5299_v39  ;;  %v2445_v29 = vadd.f32 %v5478_v28, %v5317_v17 }
 0x30c   : > { %2945 = vmatpush.bf16.msrb.mxu1 %v3954_v2 }
 0x30d   : > { %v2682_v9 = vpack.c.bf16 %v2629_v30, %v2627_v37  ;;  %3764 = vmatmul.msk.bf16.gmra.mxu2 %vm3763_vm9, %v4072_v55  ;;  %v2506_v30 = vadd.f32 %v2505_v44, %v2437_v38  ;;  %v2442_v44 = vadd.f32 %v5468_v48, %v5306_v24  ;;  %v2447_v24 = vadd.f32 %v5494_v63, %v5330_v14  ;;  %v3953_v48 = vld [vmem:[%s5667_s4] sm:$0xff] }
 0x30e   : > { %3788 = vmatmul.msk.bf16.gmra.mxu3 %vm3787_vm10, %v4072_v55  ;;  %v2452_v38 = vadd.f32 %v5521_v49, %v5344_v7 }
 0x30f   : > { %3808 = vmatmul.msk.bf16.gmra.mxu0 %vm2729_vm3, %v2682_v9 }
 0x310   : > { %v2562_v62 = vpop.f32.mrf.mxu2  ;;  %2946 = vmatpush.bf16.msrb.mxu1 %v3953_v48 }
 0x311   : > { %v2631_v59 = vpop.f32.mrf.mxu3  ;;  %v2563_v52 = vadd.f32 %v2562_v62, %v2494_v46  ;;  %v2510_v53 = vpop.f32.mrf.mxu1 }
 0x312   : > { %v5524_v12 = vpop.f32.mrf.mxu0 }
 0x313   : > { %v2632_v56 = vadd.f32 %v2631_v59, %v2563_v52 }
 0x318   : > { %v2564_v43 = vpop.f32.mrf.mxu2 }
 0x319   : > { %v2565_v25 = vadd.f32 %v2564_v43, %v2496_v32  ;;  %v2633_v58 = vpop.f32.mrf.mxu3  ;;  %v2513_v9 = vpop.f32.mrf.mxu1 }
 0x31a   : > { %v5531_v62 = vpop.f32.mrf.mxu0 }
 0x31b   : > { %v2634_v4 = vadd.f32 %v2633_v58, %v2565_v25  ;;  %v2509_v25 = vadd.f32 %v2508_v6, %v2440_v11  ;;  %v2511_v58 = vadd.f32 %v2510_v53, %v2442_v44  ;;  %v2514_v6 = vadd.f32 %v2513_v9, %v2445_v29 }
 0x31c   : > { %v2457_v7 = vadd.f32 %v5531_v62, %v5370_v22 }
 0x31d   : > { %v2683_v8 = vpack.c.bf16 %v2634_v4, %v2632_v56  ;;  %3766 = vmatmul.msk.bf16.gmra.mxu2 %vm3765_vm15, %v4072_v55 }
 0x31e   : > { %3790 = vmatmul.msk.bf16.gmra.mxu3 %vm3789_vm0, %v4072_v55  ;;  %v2501_v55 = vadd.f32 %v2500_v45, %v2432_v61  ;;  %v2504_v45 = vadd.f32 %v2503_v27, %v2435_v16  ;;  %v2450_v16 = vadd.f32 %v5505_v57, %v5337_v33  ;;  %v2455_v33 = vadd.f32 %v5524_v12, %v5361_v36  ;;  %v5572_v36 = vld [vmem:[%s5666_s3] ss:$0 sm:$0xff] }
 0x31f   : > { %3809 = vmatmul.msk.bf16.gmra.mxu0 %vm2729_vm3, %v2683_v8 }
 0x320   : > { %v2567_v26 = vpop.f32.mrf.mxu2 }
 0x321   : > { %v2636_v3 = vpop.f32.mrf.mxu3  ;;  %v2568_v42 = vadd.f32 %v2567_v26, %v2499_v51  ;;  %v2515_v1 = vpop.f32.mrf.mxu1 }
 0x322   : > { %v5539_v43 = vpop.f32.mrf.mxu0 }
 0x323   : > { %v2637_v40 = vadd.f32 %v2636_v3, %v2568_v42  ;;  %v2460_v12 = vadd.f32 %v5539_v43, %v5383_v0 }
 0x328   : > { %v2569_v20 = vpop.f32.mrf.mxu2 }
 0x329   : > { %v2570_v13 = vadd.f32 %v2569_v20, %v2501_v55  ;;  %v2638_v31 = vpop.f32.mrf.mxu3  ;;  %v2518_v10 = vpop.f32.mrf.mxu1 }
 0x32a   : > { %v2461_v23 = vpop.f32.mrf.mxu0 }
 0x32b   : > { %v2639_v19 = vadd.f32 %v2638_v31, %v2570_v13  ;;  %v2516_v13 = vadd.f32 %v2515_v1, %v2447_v24 }
 0x32d   : > { %v2684_v60 = vpack.c.bf16 %v2639_v19, %v2637_v40 }
 0x32f   : > { %3810 = vmatmul.msk.bf16.gmra.mxu0 %vm2729_vm3, %v2684_v60 }
 0x330   : > { %v2572_v5 = vpop.f32.mrf.mxu2 }
 0x331   : > { %v2641_v37 = vpop.f32.mrf.mxu3  ;;  %v2573_v34 = vadd.f32 %v2572_v5, %v2504_v45  ;;  %v2520_v42 = vpop.f32.mrf.mxu1  ;;  %v2519_v45 = vadd.f32 %v2518_v10, %v2450_v16 }
 0x332   : > { %v5551_v20 = vpop.f32.mrf.mxu0 }
 0x333   : > { %v2642_v46 = vadd.f32 %v2641_v37, %v2573_v34 }
 0x338   : > { %v2574_v15 = vpop.f32.mrf.mxu2 }
 0x339   : > { %v2575_v59 = vadd.f32 %v2574_v15, %v2506_v30  ;;  %v2643_v21 = vpop.f32.mrf.mxu3  ;;  %v2523_v5 = vpop.f32.mrf.mxu1  ;;  %v2521_v30 = vadd.f32 %v2520_v42, %v2452_v38 }
 0x33a   : > { %v5554_v14 = vpop.f32.mrf.mxu0  ;;  %v2524_v1 = vadd.f32 %v2523_v5, %v2455_v33 }
 0x33b   : > { %v2644_v32 = vadd.f32 %v2643_v21, %v2575_v59 }
 0x33d   : > { %v2685_v52 = vpack.c.bf16 %v2644_v32, %v2642_v46 }
 0x33f   : > { %3811 = vmatmul.msk.bf16.gmra.mxu0 %vm2729_vm3, %v2685_v52 }
 0x340   : > { %v2577_v50 = vpop.f32.mrf.mxu2 }
 0x341   : > { %v2646_v27 = vpop.f32.mrf.mxu3  ;;  %v2578_v56 = vadd.f32 %v2577_v50, %v2509_v25  ;;  %v2525_v21 = vpop.f32.mrf.mxu1 }
 0x342   : > { %v5560_v46 = vpop.f32.mrf.mxu0 }
 0x343   : > { %v2647_v3 = vadd.f32 %v2646_v27, %v2578_v56  ;;  %v2526_v27 = vadd.f32 %v2525_v21, %v2457_v7  ;;  %v2470_v33 = vadd.f32 %v5560_v46, %v5429_v41 }
 0x348   : > { %v2579_v4 = vpop.f32.mrf.mxu2 }
 0x349   : > { %v2580_v8 = vadd.f32 %v2579_v4, %v2511_v58  ;;  %v2648_v26 = vpop.f32.mrf.mxu3  ;;  %v2528_v49 = vpop.f32.mrf.mxu1 }
 0x34a   : > { %v5567_v11 = vpop.f32.mrf.mxu0  ;;  %v2529_v29 = vadd.f32 %v2528_v49, %v2460_v12 }
 0x34b   : > { %v2649_v61 = vadd.f32 %v2648_v26, %v2580_v8  ;;  %v2472_v7 = vadd.f32 %v5567_v11, %v5444_v35 }
 0x34d   : > { %v2686_v51 = vpack.c.bf16 %v2649_v61, %v2647_v3  ;;  %v2462_v61 = vadd.f32 %v2461_v23, %v5395_v18 }
 0x34f   : > { %3812 = vmatmul.msk.bf16.gmra.mxu0 %vm2729_vm3, %v2686_v51 }
 0x350   : > { %v2582_v39 = vpop.f32.mrf.mxu2 }
 0x351   : > { %v2651_v55 = vpop.f32.mrf.mxu3  ;;  %v2583_v31 = vadd.f32 %v2582_v39, %v2514_v6  ;;  %v2530_v3 = vpop.f32.mrf.mxu1 }
 0x352   : > { %v2531_v24 = vadd.f32 %v2530_v3, %v2462_v61 }
 0x353   : > { %v2652_v60 = vadd.f32 %v2651_v55, %v2583_v31 }
 0x358   : > { %v2584_v40 = vpop.f32.mrf.mxu2 }
 0x359   : > { %v2585_v19 = vadd.f32 %v2584_v40, %v2516_v13  ;;  %v2653_v53 = vpop.f32.mrf.mxu3  ;;  %v2533_v13 = vpop.f32.mrf.mxu1 }
 0x35b   : > { %v2654_v17 = vadd.f32 %v2653_v53, %v2585_v19 }
 0x35d   : > { %v2687_v28 = vpack.c.bf16 %v2654_v17, %v2652_v60  ;;  %v2465_v17 = vadd.f32 %v5551_v20, %v5406_v54 }
 0x35f   : > { %3813 = vmatmul.msk.bf16.gmra.mxu0 %vm2729_vm3, %v2687_v28  ;;  %v2534_v38 = vadd.f32 %v2533_v13, %v2465_v17 }
 0x360   : > { %v2587_v63 = vpop.f32.mrf.mxu2 }
 0x361   : > { %v2656_v37 = vpop.f32.mrf.mxu3  ;;  %v2588_v9 = vadd.f32 %v2587_v63, %v2519_v45  ;;  %v2535_v5 = vpop.f32.mrf.mxu1  ;;  %v2467_v63 = vadd.f32 %v5554_v14, %v5419_v47 }
 0x363   : > { %v2657_v32 = vadd.f32 %v2656_v37, %v2588_v9 }
 0x368   : > { %v2589_v34 = vpop.f32.mrf.mxu2 }
 0x369   : > { %v2590_v15 = vadd.f32 %v2589_v34, %v2521_v30  ;;  %v2658_v59 = vpop.f32.mrf.mxu3  ;;  %v2536_v30 = vadd.f32 %v2535_v5, %v2467_v63 }
 0x36b   : > { %v2659_v52 = vadd.f32 %v2658_v59, %v2590_v15 }
 0x36d   : > { %v2688_v2 = vpack.c.bf16 %v2659_v52, %v2657_v32 }
 0x36f   : > { %3814 = vmatmul.msk.bf16.gmra.mxu0 %vm2729_vm3, %v2688_v2  ;;  %v2538_v2 = vpop.f32.mrf.mxu1 }
 0x370   : > { %v2592_v50 = vpop.f32.mrf.mxu2 }
 0x371   : > { %v2661_v57 = vpop.f32.mrf.mxu3  ;;  %v2593_v44 = vadd.f32 %v2592_v50, %v2524_v1 }
 0x373   : > { %v2662_v4 = vadd.f32 %v2661_v57, %v2593_v44 }
 0x378   : > { %v2594_v25 = vpop.f32.mrf.mxu2 }
 0x379   : > { %v2595_v58 = vadd.f32 %v2594_v25, %v2526_v27  ;;  %v2663_v56 = vpop.f32.mrf.mxu3  ;;  %v2539_v27 = vadd.f32 %v2538_v2, %v2470_v33  ;;  %v2540_v25 = vpop.f32.mrf.mxu1  ;;  %v5610_v33 = vld [vmem:[%s5668_s5] ss:$0 sm:$0xff] }
 0x37b   : > { %v2664_v8 = vadd.f32 %v2663_v56, %v2595_v58  ;;  %v2541_v58 = vadd.f32 %v2540_v25, %v2472_v7 }
 0x37c   : > { %v2775_v26 = vpop.f32.mrf.mxu0 }
 0x37d   : > { %v2689_v10 = vpack.c.bf16 %v2664_v8, %v2662_v4  ;;  %v2776_v51 = vadd.f32 %v5572_v36, %v2775_v26 }
 0x37f   : > { %3815 = vmatmul.msk.bf16.gmra.mxu0 %vm2729_vm3, %v2689_v10  ;;  %v2835_v48 = vmax.f32 %v2776_v51, 0.0 }
 0x380   : > { %v2597_v22 = vpop.f32.mrf.mxu2 }
 0x381   : > { %v2666_v62 = vpop.f32.mrf.mxu3  ;;  %v2598_v6 = vadd.f32 %v2597_v22, %v2529_v29 }
 0x383   : > { %v2667_v60 = vadd.f32 %v2666_v62, %v2598_v6 }
 0x384   : > { %v2777_v39 = vpop.f32.mrf.mxu0 }
 0x385   : > { %v2778_v55 = vadd.f32 %v5572_v36, %v2777_v39 }
 0x387   : > { %v2836_v42 = vmax.f32 %v2778_v55, 0.0 }
 0x388   : > { %v2599_v31 = vpop.f32.mrf.mxu2 }
 0x389   : > { %v2859_v40 = vpack.c.bf16 %v2836_v42, %v2835_v48  ;;  %v2600_v19 = vadd.f32 %v2599_v31, %v2531_v24  ;;  %v2668_v53 = vpop.f32.mrf.mxu3 }
 0x38b   : > { %v2669_v0 = vadd.f32 %v2668_v53, %v2600_v19  ;;  %2947 = vmatmul.bf16.vlgmr.msrb.gmra.mxu1 %v2859_v40 }
 0x38c   : > { %v2780_v43 = vpop.f32.mrf.mxu0 }
 0x38d   : > { %v2690_v18 = vpack.c.bf16 %v2669_v0, %v2667_v60  ;;  %v2781_v16 = vadd.f32 %v5572_v36, %v2780_v43 }
 0x38f   : > { %3816 = vmatmul.msk.bf16.gmra.mxu0 %vm2729_vm3, %v2690_v18  ;;  %v2837_v9 = vmax.f32 %v2781_v16, 0.0 }
 0x390   : > { %v2602_v23 = vpop.f32.mrf.mxu2 }
 0x391   : > { %v2671_v28 = vpop.f32.mrf.mxu3  ;;  %v2603_v34 = vadd.f32 %v2602_v23, %v2534_v38 }
 0x393   : > { %v2672_v54 = vadd.f32 %v2671_v28, %v2603_v34 }
 0x394   : > { %v2782_v37 = vpop.f32.mrf.mxu0 }
 0x395   : > { %v2783_v45 = vadd.f32 %v5572_v36, %v2782_v37 }
 0x397   : > { %v2838_v15 = vmax.f32 %v2783_v45, 0.0 }
 0x398   : > { %v2604_v59 = vpop.f32.mrf.mxu2 }
 0x399   : > { %v2860_v21 = vpack.c.bf16 %v2838_v15, %v2837_v9  ;;  %v2605_v32 = vadd.f32 %v2604_v59, %v2536_v30  ;;  %v2673_v52 = vpop.f32.mrf.mxu3 }
 0x39b   : > { %v2674_v20 = vadd.f32 %v2673_v52, %v2605_v32  ;;  %2952 = vmatmul.bf16.gmra.mxu1 %v2860_v21 }
 0x39c   : > { %v2785_v50 = vpop.f32.mrf.mxu0 }
 0x39d   : > { %v2691_v47 = vpack.c.bf16 %v2674_v20, %v2672_v54  ;;  %v2786_v49 = vadd.f32 %v5572_v36, %v2785_v50 }
 0x39f   : > { %3817 = vmatmul.msk.bf16.gmra.mxu0 %vm2729_vm3, %v2691_v47  ;;  %v2839_v56 = vmax.f32 %v2786_v49, 0.0 }
 0x3a0   : > { %v2607_v14 = vpop.f32.mrf.mxu2 }
 0x3a1   : > { %v2676_v57 = vpop.f32.mrf.mxu3  ;;  %v2608_v4 = vadd.f32 %v2607_v14, %v2539_v27 }
 0x3a3   : > { %v2677_v41 = vadd.f32 %v2676_v57, %v2608_v4 }
 0x3a4   : > { %v2787_v1 = vpop.f32.mrf.mxu0 }
 0x3a5   : > { %v2788_v44 = vadd.f32 %v5572_v36, %v2787_v1 }
 0x3a7   : > { %v2840_v8 = vmax.f32 %v2788_v44, 0.0 }
 0x3a8   : > { %v2609_v26 = vpop.f32.mrf.mxu2 }
 0x3a9   : > { %v2861_v10 = vpack.c.bf16 %v2840_v8, %v2839_v56  ;;  %v2610_v3 = vadd.f32 %v2609_v26, %v2541_v58  ;;  %v2678_v22 = vpop.f32.mrf.mxu3 }
 0x3ab   : > { %v2679_v46 = vadd.f32 %v2678_v22, %v2610_v3  ;;  %2957 = vmatmul.bf16.gmra.mxu1 %v2861_v10 }
 0x3ac   : > { %v2790_v12 = vpop.f32.mrf.mxu0 }
 0x3ad   : > { %v2692_v35 = vpack.c.bf16 %v2679_v46, %v2677_v41  ;;  %v2791_v11 = vadd.f32 %v5572_v36, %v2790_v12 }
 0x3af   : > { %3818 = vmatmul.msk.bf16.gmra.mxu0 %vm2729_vm3, %v2692_v35  ;;  %v2841_v51 = vmax.f32 %v2791_v11, 0.0 }
 0x3b4   : > { %v2792_v62 = vpop.f32.mrf.mxu0 }
 0x3b5   : > { %v2793_v61 = vadd.f32 %v5572_v36, %v2792_v62 }
 0x3b7   : > { %v2842_v39 = vmax.f32 %v2793_v61, 0.0 }
 0x3b9   : > { %v2862_v29 = vpack.c.bf16 %v2842_v39, %v2841_v51 }
 0x3bb   : > { %2962 = vmatmul.bf16.gmra.mxu1 %v2862_v29 }
 0x3bc   : > { %v2795_v55 = vpop.f32.mrf.mxu0 }
 0x3bd   : > { %v2796_v24 = vadd.f32 %v5572_v36, %v2795_v55 }
 0x3bf   : > { %v2843_v42 = vmax.f32 %v2796_v24, 0.0 }
 0x3c4   : > { %v2797_v48 = vpop.f32.mrf.mxu0 }
 0x3c5   : > { %v2798_v6 = vadd.f32 %v5572_v36, %v2797_v48 }
 0x3c7   : > { %v2844_v13 = vmax.f32 %v2798_v6, 0.0 }
 0x3c9   : > { %v2863_v31 = vpack.c.bf16 %v2844_v13, %v2843_v42 }
 0x3cb   : > { %2967 = vmatmul.bf16.gmra.mxu1 %v2863_v31 }
 0x3cc   : > { %v2800_v40 = vpop.f32.mrf.mxu0 }
 0x3cd   : > { %v2801_v19 = vadd.f32 %v5572_v36, %v2800_v40 }
 0x3cf   : > { %v2845_v0 = vmax.f32 %v2801_v19, 0.0 }
 0x3d4   : > { %v2802_v53 = vpop.f32.mrf.mxu0 }
 0x3d5   : > { %v2803_v60 = vadd.f32 %v5572_v36, %v2802_v53 }
 0x3d7   : > { %v2846_v43 = vmax.f32 %v2803_v60, 0.0 }
 0x3d9   : > { %v2864_v18 = vpack.c.bf16 %v2846_v43, %v2845_v0 }
 0x3db   : > { %2972 = vmatmul.bf16.gmra.mxu1 %v2864_v18 }
 0x3dc   : > { %v2805_v23 = vpop.f32.mrf.mxu0 }
 0x3dd   : > { %v2806_v17 = vadd.f32 %v5572_v36, %v2805_v23 }
 0x3df   : > { %v2847_v63 = vmax.f32 %v2806_v17, 0.0 }
 0x3e4   : > { %v2807_v28 = vpop.f32.mrf.mxu0 }
 0x3e5   : > { %v2808_v5 = vadd.f32 %v5572_v36, %v2807_v28 }
 0x3e7   : > { %v2848_v16 = vmax.f32 %v2808_v5, 0.0 }
 0x3e9   : > { %v2865_v37 = vpack.c.bf16 %v2848_v16, %v2847_v63 }
 0x3eb   : > { %2977 = vmatmul.bf16.gmra.mxu1 %v2865_v37 }
 0x3ec   : > { %v2810_v38 = vpop.f32.mrf.mxu0 }
 0x3ed   : > { %v2811_v45 = vadd.f32 %v5572_v36, %v2810_v38 }
 0x3ef   : > { %v2849_v34 = vmax.f32 %v2811_v45, 0.0 }
 0x3f4   : > { %v2812_v30 = vpop.f32.mrf.mxu0 }
 0x3f5   : > { %v2813_v9 = vadd.f32 %v5572_v36, %v2812_v30 }
 0x3f7   : > { %v2850_v15 = vmax.f32 %v2813_v9, 0.0 }
 0x3f9   : > { %v2866_v59 = vpack.c.bf16 %v2850_v15, %v2849_v34 }
 0x3fb   : > { %2982 = vmatmul.bf16.gmra.mxu1 %v2866_v59 }
 0x3fc   : > { %v2815_v21 = vpop.f32.mrf.mxu0 }
 0x3fd   : > { %v2816_v32 = vadd.f32 %v5572_v36, %v2815_v21 }
 0x3ff   : > { %v2851_v20 = vmax.f32 %v2816_v32, 0.0 }
 0x404   : > { %v2817_v52 = vpop.f32.mrf.mxu0 }
 0x405   : > { %v2818_v54 = vadd.f32 %v5572_v36, %v2817_v52 }
 0x407   : > { %v2852_v2 = vmax.f32 %v2818_v54, 0.0 }
 0x408   : > { %v2948_v50 = vpop.f32.mrf.mxu1 }
 0x409   : > { %v2867_v47 = vpack.c.bf16 %v2852_v2, %v2851_v20  ;;  %v2949_v7 = vadd.f32 %v5610_v33, %v2948_v50 }
 0x40b   : > { %2987 = vmatmul.bf16.gmra.mxu1 %v2867_v47 }
 0x40c   : > { %v2820_v14 = vpop.f32.mrf.mxu0 }
 0x40d   : > { %v2821_v1 = vadd.f32 %v5572_v36, %v2820_v14 }
 0x40f   : > { %v2853_v58 = vmax.f32 %v2821_v1, 0.0 }
 0x410   : > { %v2950_v57 = vpop.f32.mrf.mxu1 }
 0x411   : > { %v2951_v49 = vadd.f32 %v5610_v33, %v2950_v57 }
 0x413   : > { %v3964_v27 = vpack.c.bf16 %v2951_v49, %v2949_v7 }
 0x414   : > { %v2822_v44 = vpop.f32.mrf.mxu0 }
 0x415   : > { %3965 = vst [vmem:[%s5618_s7] sm:$0xff] %v3964_v27   ;;  %v2823_v25 = vadd.f32 %v5572_v36, %v2822_v44 }
 0x417   : > { %v2854_v56 = vmax.f32 %v2823_v25, 0.0 }
 0x418   : > { %v2953_v4 = vpop.f32.mrf.mxu1 }
 0x419   : > { %v2868_v8 = vpack.c.bf16 %v2854_v56, %v2853_v58  ;;  %v2954_v3 = vadd.f32 %v5610_v33, %v2953_v4 }
 0x41b   : > { %2992 = vmatmul.bf16.gmra.mxu1 %v2868_v8 }
 0x41c   : > { %v2825_v26 = vpop.f32.mrf.mxu0 }
 0x41d   : > { %v2826_v41 = vadd.f32 %v5572_v36, %v2825_v26 }
 0x41f   : > { %v2855_v11 = vmax.f32 %v2826_v41, 0.0 }
 0x420   : > { %v2955_v10 = vpop.f32.mrf.mxu1 }
 0x421   : > { %v2956_v22 = vadd.f32 %v5610_v33, %v2955_v10 }
 0x423   : > { %v3969_v46 = vpack.c.bf16 %v2956_v22, %v2954_v3 }
 0x424   : > { %v2827_v12 = vpop.f32.mrf.mxu0 }
 0x425   : > { %4021 = vst [vmem:[%s5618_s7 + $0x8] sm:$0xff] %v3969_v46   ;;  %v2828_v35 = vadd.f32 %v5572_v36, %v2827_v12 }
 0x427   : > { %v2856_v62 = vmax.f32 %v2828_v35, 0.0 }
 0x428   : > { %v2958_v61 = vpop.f32.mrf.mxu1 }
 0x429   : > { %v2869_v51 = vpack.c.bf16 %v2856_v62, %v2855_v11  ;;  %v2959_v55 = vadd.f32 %v5610_v33, %v2958_v61 }
 0x42b   : > { %2997 = vmatmul.bf16.gmra.mxu1 %v2869_v51 }
 0x42c   : > { %v2830_v39 = vpop.f32.mrf.mxu0 }
 0x42d   : > { %v2831_v48 = vadd.f32 %v5572_v36, %v2830_v39 }
 0x42f   : > { %v2857_v31 = vmax.f32 %v2831_v48, 0.0 }
 0x430   : > { %v2960_v29 = vpop.f32.mrf.mxu1 }
 0x431   : > { %v2961_v24 = vadd.f32 %v5610_v33, %v2960_v29 }
 0x433   : > { %v3974_v6 = vpack.c.bf16 %v2961_v24, %v2959_v55 }
 0x434   : > { %v2832_v42 = vpop.f32.mrf.mxu0 }
 0x435   : > { %4022 = vst [vmem:[%s5618_s7 + $0x10] sm:$0xff] %v3974_v6   ;;  %v2833_v13 = vadd.f32 %v5572_v36, %v2832_v42 }
 0x437   : > { %v2858_v40 = vmax.f32 %v2833_v13, 0.0 }
 0x438   : > { %v2963_v19 = vpop.f32.mrf.mxu1 }
 0x439   : > { %v2870_v53 = vpack.c.bf16 %v2858_v40, %v2857_v31  ;;  %v2964_v0 = vadd.f32 %v5610_v33, %v2963_v19 }
 0x43b   : > { %3002 = vmatmul.bf16.gmra.mxu1 %v2870_v53 }
 0x440   : > { %v2965_v60 = vpop.f32.mrf.mxu1 }
 0x441   : > { %v2966_v43 = vadd.f32 %v5610_v33, %v2965_v60 }
 0x443   : > { %v3979_v18 = vpack.c.bf16 %v2966_v43, %v2964_v0 }
 0x445   : > { %4023 = vst [vmem:[%s5618_s7 + $0x18] sm:$0xff] %v3979_v18  }
 0x448   : > { %v2968_v23 = vpop.f32.mrf.mxu1 }
 0x449   : > { %v2969_v28 = vadd.f32 %v5610_v33, %v2968_v23 }
 0x450   : > { %v2970_v17 = vpop.f32.mrf.mxu1 }
 0x451   : > { %v2971_v36 = vadd.f32 %v5610_v33, %v2970_v17 }
 0x453   : > { %v3984_v5 = vpack.c.bf16 %v2971_v36, %v2969_v28 }
 0x455   : > { %4024 = vst [vmem:[%s5618_s7 + $0x20] sm:$0xff] %v3984_v5  }
 0x458   : > { %v2973_v63 = vpop.f32.mrf.mxu1 }
 0x459   : > { %v2974_v37 = vadd.f32 %v5610_v33, %v2973_v63 }
 0x460   : > { %v2975_v16 = vpop.f32.mrf.mxu1 }
 0x461   : > { %v2976_v38 = vadd.f32 %v5610_v33, %v2975_v16 }
 0x463   : > { %v3989_v45 = vpack.c.bf16 %v2976_v38, %v2974_v37 }
 0x465   : > { %4025 = vst [vmem:[%s5618_s7 + $0x28] sm:$0xff] %v3989_v45  }
 0x468   : > { %v2978_v30 = vpop.f32.mrf.mxu1 }
 0x469   : > { %v2979_v34 = vadd.f32 %v5610_v33, %v2978_v30 }
 0x470   : > { %v2980_v9 = vpop.f32.mrf.mxu1 }
 0x471   : > { %v2981_v15 = vadd.f32 %v5610_v33, %v2980_v9 }
 0x473   : > { %v3994_v59 = vpack.c.bf16 %v2981_v15, %v2979_v34 }
 0x475   : > { %4026 = vst [vmem:[%s5618_s7 + $0x30] sm:$0xff] %v3994_v59  }
 0x478   : > { %v2983_v21 = vpop.f32.mrf.mxu1 }
 0x479   : > { %v2984_v52 = vadd.f32 %v5610_v33, %v2983_v21 }
 0x480   : > { %v2985_v32 = vpop.f32.mrf.mxu1 }
 0x481   : > { %v2986_v54 = vadd.f32 %v5610_v33, %v2985_v32 }
 0x483   : > { %v3999_v20 = vpack.c.bf16 %v2986_v54, %v2984_v52 }
 0x485   : > { %4027 = vst [vmem:[%s5618_s7 + $0x38] sm:$0xff] %v3999_v20  }
 0x488   : > { %v2988_v2 = vpop.f32.mrf.mxu1 }
 0x489   : > { %v2989_v47 = vadd.f32 %v5610_v33, %v2988_v2 }
 0x490   : > { %v2990_v50 = vpop.f32.mrf.mxu1 }
 0x491   : > { %v2991_v14 = vadd.f32 %v5610_v33, %v2990_v50 }
 0x493   : > { %v4004_v57 = vpack.c.bf16 %v2991_v14, %v2989_v47 }
 0x495   : > { %4028 = vst [vmem:[%s5618_s7 + $0x40] sm:$0xff] %v4004_v57  }
 0x498   : > { %v2993_v7 = vpop.f32.mrf.mxu1 }
 0x499   : > { %v2994_v1 = vadd.f32 %v5610_v33, %v2993_v7 }
 0x4a0   : > { %v2995_v49 = vpop.f32.mrf.mxu1 }
 0x4a1   : > { %v2996_v27 = vadd.f32 %v5610_v33, %v2995_v49 }
 0x4a3   : > { %v4009_v44 = vpack.c.bf16 %v2996_v27, %v2994_v1 }
 0x4a5   : > { %4029 = vst [vmem:[%s5618_s7 + $0x48] sm:$0xff] %v4009_v44  }
 0x4a8   : > { %v2998_v25 = vpop.f32.mrf.mxu1 }
 0x4a9   : > { %v2999_v56 = vadd.f32 %v5610_v33, %v2998_v25 }
 0x4b0   : > { %v3000_v58 = vpop.f32.mrf.mxu1 }
 0x4b1   : > { %v3001_v4 = vadd.f32 %v5610_v33, %v3000_v58 }
 0x4b3   : > { %v4014_v8 = vpack.c.bf16 %v3001_v4, %v2999_v56 }
 0x4b5   : > { %4030 = vst [vmem:[%s5618_s7 + $0x50] sm:$0xff] %v4014_v8  }
 0x4b8   : > { %v3003_v26 = vpop.f32.mrf.mxu1 }
 0x4b9   : > { %v3004_v3 = vadd.f32 %v5610_v33, %v3003_v26 }
 0x4c0   : > { %v3005_v10 = vpop.f32.mrf.mxu1 }
 0x4c1   : > { %v3006_v22 = vadd.f32 %v5610_v33, %v3005_v10 }
 0x4c3   : > { %v4019_v41 = vpack.c.bf16 %v3006_v22, %v3004_v3 }
 0x4c5   : > { %4031 = vst [vmem:[%s5618_s7 + $0x58] sm:$0xff] %v4019_v41  }
 0x4c6 PF: > { %s16_s21 = sadd.s32 1, %s4069_s21  }
 0x4c7   : > { %p13_p4 = scmp.ge.s32.totalorder %s16_s21, 4  }
 0x4c9   :  { %15 = sbr.rel (!%p13_p4) target bundleno = 1 (0x1), region = 74 }

</bundles_post_ra>
